<compile_context>
chip_gen: v6e
topology: v6e:2x2x1
jax: 0.10.0
libtpu: 0.0.40
codegen_flags: <defaults>
</compile_context>

<pallas_src>
import jax
import jax.numpy as jnp
from jax.experimental import pallas as pl
from jax.experimental.pallas import tpu as pltpu  # noqa: F401  (not needed at this size)

# --- module-consistent small shapes ------------------------------------------
B = 2        # batch
C = 4        # input_channels
T = 8        # sequence length
E = 32       # encoder_output_dim
H = 32       # n_hidden
G = 4 * H    # fused gate width (128 lanes)


# =============================================================================
# Fused kernel: Linear encoder + 2-layer LSTM (PyTorch semantics, zero init state)
# =============================================================================
def _cpc_kernel(x_ref, wenc_ref, benc_ref, wxp_ref, bxp_ref, wrec_ref, b1_ref,
                enc_ref, rnn_ref):
    x2 = x_ref[...]                                           # (B, C*T)

    # Encoder output for all timesteps, lane-dense (B, T*E); depends only on x.
    enc_ref[...] = (jnp.dot(x2, wenc_ref[...], preferred_element_type=jnp.float32)
                    + benc_ref[...])

    # Layer-0 input projection (+ bias) for ALL timesteps, (B, T*4H); only x-dep.
    xp = (jnp.dot(x2, wxp_ref[...], preferred_element_type=jnp.float32)
          + bxp_ref[...])

    wrec = wrec_ref[...]                                      # (2H, 2G) block RHS
    b1 = b1_ref[...]                                          # (1, G)

    zeros = jnp.zeros((B, H), jnp.float32)
    c0 = zeros
    c1 = zeros

    def cell(gates, c):
        # gate column order (after repack): i, f, o, g
        # whole-vreg activations, slice afterwards (two independent EUP pushes)
        sg = jax.nn.sigmoid(gates)
        tg = jnp.tanh(gates)
        c_new = sg[:, H:2 * H] * c + sg[:, 0:H] * tg[:, 3 * H:4 * H]
        h_new = sg[:, 2 * H:3 * H] * jnp.tanh(c_new)
        return h_new, c_new

    # Wavefront schedule: at step s, layer 0 processes time s and layer 1 processes
    # time s-1, so both recurrent matmuls are independent -> one fused dot per step.
    # s = 0: layer 0 only, zero recurrent state (no dot needed).
    h0_prev, c0 = cell(xp[:, 0:G], c0)                        # h0[0]
    h1_prev = zeros                                           # h1[-1] = 0

    h1_out = []
    for s in range(1, T + 1):                                 # fully unrolled
        lhs = jnp.concatenate([h0_prev, h1_prev], axis=-1)    # (B, 2H)
        rec = jnp.dot(lhs, wrec, preferred_element_type=jnp.float32)  # (B, 2G)
        # layer 1 at time s-1: gates = h0[s-1]@wih1 + h1[s-2]@whh1 + b1
        h1_new, c1 = cell(rec[:, G:2 * G] + b1, c1)
        h1_out.append(h1_new)
        # layer 0 at time s: gates = xp[s] + h0[s-1]@whh0
        if s < T:
            h0_new, c0 = cell(xp[:, s * G:(s + 1) * G] + rec[:, 0:G], c0)
        else:
            h0_new = h0_prev
        h0_prev, h1_prev = h0_new, h1_new

    # lane-dense single store: (B, T*H) = (2, 256); wrapper reshapes to (B, T, H)
    rnn_ref[...] = jnp.concatenate(h1_out, axis=-1)


@jax.jit
def cpc_forward(x, kparams):
    """x: (B, 1, C, T) f32 -> (input_encoded (B,T,E), output_rnn (B,T,H))."""
    (wenc_d, benc_d, wxp_d, bxp_d, wrec, b1) = kparams
    # Contiguous flatten only (NO transpose): row index is c*T + t, which the
    # block-diagonal weights below are built for.
    x2 = x.reshape(B, C * T)

    enc2d, rnn2d = pl.pallas_call(
        _cpc_kernel,
        out_shape=(
            jax.ShapeDtypeStruct((B, T * E), jnp.float32),
            jax.ShapeDtypeStruct((B, T * H), jnp.float32),
        ),
    )(x2, wenc_d, benc_d, wxp_d, bxp_d, wrec, b1)

    return enc2d.reshape(B, T, E), rnn2d.reshape(B, T, H)


# =============================================================================
# Parameters: PyTorch-layout construction + one-time repack to kernel layout
# =============================================================================
def make_params(key):
    ks = jax.random.split(key, 16)
    # Encoder Linear: weight (E, C), bias (E,)
    enc_w = jax.random.normal(ks[0], (E, C), jnp.float32) * 0.1
    enc_b = jax.random.normal(ks[1], (E,), jnp.float32) * 0.1

    def layer(k0, k1, k2, k3, in_dim):
        w_ih = jax.random.normal(k0, (4 * H, in_dim), jnp.float32) * 0.1
        w_hh = jax.random.normal(k1, (4 * H, H), jnp.float32) * 0.1
        b_ih = jax.random.normal(k2, (4 * H,), jnp.float32) * 0.1
        b_hh = jax.random.normal(k3, (4 * H,), jnp.float32) * 0.1
        return w_ih, w_hh, b_ih, b_hh

    l0 = layer(ks[2], ks[3], ks[4], ks[5], E)
    l1 = layer(ks[6], ks[7], ks[8], ks[9], H)
    return (enc_w, enc_b), l0, l1


def _repack_lstm(w_ih, w_hh, b_ih, b_hh):
    """PyTorch (4H, in) row-order i,f,g,o  ->  (in, 4H) column-order i,f,o,g."""
    def reorder_T(w):
        i, f, g, o = jnp.split(w, 4, axis=0)
        return jnp.concatenate([i, f, o, g], axis=0).T
    bi, bf, bg, bo = jnp.split(b_ih + b_hh, 4)
    b = jnp.concatenate([bi, bf, bo, bg]).reshape(1, G)
    return reorder_T(w_ih), reorder_T(w_hh), b


def prepare_params(params):
    """One-time repack of PyTorch-layout params into the fused kernel layout."""
    (enc_w, enc_b), l0, l1 = params
    ew = enc_w.T                         # (C, E)
    eb = enc_b.reshape(1, E)
    wih0, whh0, b0 = _repack_lstm(*l0)   # (E,G), (H,G), (1,G)
    wih1, whh1, b1 = _repack_lstm(*l1)   # (H,G), (H,G), (1,G)

    # Encoder folded into layer-0 input projection: xp = x_btc @ (ew@wih0) + (eb@wih0+b0)
    wih0f = ew @ wih0                    # (C, G)
    b0f = eb @ wih0 + b0                 # (1, G)

    # Block-diagonal "time-dense" weights acting on x flattened as (B, C*T)
    # (row index c*T + t):
    #   wenc_d[c*T + t, t'*E + e] = ew[c, e]    * delta(t, t')
    #   wxp_d [c*T + t, t'*G + g] = wih0f[c, g] * delta(t, t')
    eye_t = jnp.eye(T, dtype=jnp.float32)
    wenc_d = (ew[:, None, None, :] * eye_t[None, :, :, None]).reshape(C * T, T * E)
    wxp_d = (wih0f[:, None, None, :] * eye_t[None, :, :, None]).reshape(C * T, T * G)
    benc_d = jnp.tile(eb, (1, T))        # (1, T*E)
    bxp_d = jnp.tile(b0f, (1, T))        # (1, T*G)

    # Fused recurrent block RHS for the wavefront step:
    #   [h0_prev, h1_prev] @ [[whh0, wih1], [0, whh1]]  ->  [layer0 rec | layer1 gates]
    wrec = jnp.concatenate(
        [jnp.concatenate([whh0, wih1], axis=1),
         jnp.concatenate([jnp.zeros((H, G), jnp.float32), whh1], axis=1)],
        axis=0)                          # (2H, 2G) = (64, 256)

    return (wenc_d, benc_d, wxp_d, bxp_d, wrec, b1)


# =============================================================================
# Pure-JAX reference (PyTorch-layout params, PyTorch gate order i,f,g,o)
# =============================================================================
def _ref_forward(x, params):
    (enc_w, enc_b), l0, l1 = params
    x_btc = jnp.transpose(x[:, 0, :, :], (0, 2, 1))
    enc = x_btc @ enc_w.T + enc_b        # (B, T, E)

    def lstm_layer(inp, w_ih, w_hh, b_ih, b_hh):
        def step(carry, x_t):
            h, c = carry
            gates = x_t @ w_ih.T + h @ w_hh.T + b_ih + b_hh
            i = jax.nn.sigmoid(gates[:, 0:H])
            f = jax.nn.sigmoid(gates[:, H:2 * H])
            g = jnp.tanh(gates[:, 2 * H:3 * H])
            o = jax.nn.sigmoid(gates[:, 3 * H:4 * H])
            c_new = f * c + i * g
            h_new = o * jnp.tanh(c_new)
            return (h_new, c_new), h_new

        init = (jnp.zeros((B, H), jnp.float32), jnp.zeros((B, H), jnp.float32))
        _, ys = jax.lax.scan(step, init, jnp.transpose(inp, (1, 0, 2)))
        return jnp.transpose(ys, (1, 0, 2))

    h1 = lstm_layer(enc, *l0)
    h2 = lstm_layer(h1, *l1)
    return enc, h2


if __name__ == "__main__":
    key = jax.random.PRNGKey(0)
    k_param, k_x = jax.random.split(key)
    params = make_params(k_param)
    kparams = prepare_params(params)          # one-time weight repack
    x = jax.random.normal(k_x, (B, 1, C, T), jnp.float32)

    input_encoded, output_rnn = cpc_forward(x, kparams)
    jax.block_until_ready((input_encoded, output_rnn))

    ref_enc, ref_rnn = _ref_forward(x, params)
    assert input_encoded.shape == (B, T, E)
    assert output_rnn.shape == (B, T, H)
    assert jnp.allclose(input_encoded, ref_enc, atol=1e-3), "encoder mismatch"
    assert jnp.allclose(output_rnn, ref_rnn, atol=1e-3), "lstm mismatch"

    print("KERNEL_OK")
</pallas_src>

<mosaic_0001>
module attributes {stable_mosaic.version = 11 : i64} {
  func.func @_cpc_kernel(%arg0: memref<2x32xf32, #tpu.memory_space<vmem>>, %arg1: memref<32x256xf32, #tpu.memory_space<vmem>>, %arg2: memref<1x256xf32, #tpu.memory_space<vmem>>, %arg3: memref<32x1024xf32, #tpu.memory_space<vmem>>, %arg4: memref<1x1024xf32, #tpu.memory_space<vmem>>, %arg5: memref<64x256xf32, #tpu.memory_space<vmem>>, %arg6: memref<1x128xf32, #tpu.memory_space<vmem>>, %arg7: memref<2x256xf32, #tpu.memory_space<vmem>>, %arg8: memref<2x256xf32, #tpu.memory_space<vmem>>) attributes {dimension_semantics = [], scalar_prefetch = 0 : i64, scratch_operands = 0 : i64, tpu.core_type = #tpu.core_type<tc>} {
    %c0 = arith.constant 0 : index
    %c0_0 = arith.constant 0 : index
    %0 = vector.load %arg0[%c0, %c0_0] : memref<2x32xf32, #tpu.memory_space<vmem>>, vector<2x32xf32>
    %c0_1 = arith.constant 0 : index
    %c0_2 = arith.constant 0 : index
    %1 = vector.load %arg1[%c0_1, %c0_2] : memref<32x256xf32, #tpu.memory_space<vmem>>, vector<32x256xf32>
    %cst = arith.constant dense<0.000000e+00> : vector<2x256xf32>
    %2 = tpu.matmul %0, %1, %cst {dimension_numbers = #tpu.dot_dimension_numbers<[1], [0], [0], [1], [0, 0, 1, 1], [], []>} : vector<2x32xf32>, vector<32x256xf32>, vector<2x256xf32> -> vector<2x256xf32>
    %c0_3 = arith.constant 0 : index
    %c0_4 = arith.constant 0 : index
    %3 = vector.load %arg2[%c0_3, %c0_4] : memref<1x256xf32, #tpu.memory_space<vmem>>, vector<1x256xf32>
    %4 = vector.broadcast %3 : vector<1x256xf32> to vector<2x256xf32>
    %5 = arith.addf %2, %4 : vector<2x256xf32>
    %c0_5 = arith.constant 0 : index
    %c0_6 = arith.constant 0 : index
    %6 = vector.load %arg7[%c0_5, %c0_6] : memref<2x256xf32, #tpu.memory_space<vmem>>, vector<2x256xf32>
    tpu.vector_store %arg7[%c0_5, %c0_6], %5 {strides = array<i32>} : memref<2x256xf32, #tpu.memory_space<vmem>>, vector<2x256xf32>,
    %c0_7 = arith.constant 0 : index
    %c0_8 = arith.constant 0 : index
    %7 = vector.load %arg3[%c0_7, %c0_8] : memref<32x1024xf32, #tpu.memory_space<vmem>>, vector<32x1024xf32>
    %cst_9 = arith.constant dense<0.000000e+00> : vector<2x1024xf32>
    %8 = tpu.matmul %0, %7, %cst_9 {dimension_numbers = #tpu.dot_dimension_numbers<[1], [0], [0], [1], [0, 0, 1, 1], [], []>} : vector<2x32xf32>, vector<32x1024xf32>, vector<2x1024xf32> -> vector<2x1024xf32>
    %c0_10 = arith.constant 0 : index
    %c0_11 = arith.constant 0 : index
    %9 = vector.load %arg4[%c0_10, %c0_11] : memref<1x1024xf32, #tpu.memory_space<vmem>>, vector<1x1024xf32>
    %10 = vector.broadcast %9 : vector<1x1024xf32> to vector<2x1024xf32>
    %11 = arith.addf %8, %10 : vector<2x1024xf32>
    %c0_12 = arith.constant 0 : index
    %c0_13 = arith.constant 0 : index
    %12 = vector.load %arg5[%c0_12, %c0_13] : memref<64x256xf32, #tpu.memory_space<vmem>>, vector<64x256xf32>
    %c0_14 = arith.constant 0 : index
    %c0_15 = arith.constant 0 : index
    %13 = vector.load %arg6[%c0_14, %c0_15] : memref<1x128xf32, #tpu.memory_space<vmem>>, vector<1x128xf32>
    %cst_16 = arith.constant 0.000000e+00 : f32
    %14 = vector.broadcast %cst_16 : f32 to vector<2x32xf32>
    %15 = vector.extract_strided_slice %11 {offsets = [0, 0], sizes = [2, 128], strides = [1, 1]} : vector<2x1024xf32> to vector<2x128xf32>
    %16 = arith.negf %15 : vector<2x128xf32>
    %17 = math.exp %16 : vector<2x128xf32>
    %cst_17 = arith.constant 1.000000e+00 : f32
    %18 = vector.broadcast %cst_17 : f32 to vector<2x128xf32>
    %19 = arith.addf %18, %17 : vector<2x128xf32>
    %20 = arith.divf %18, %19 : vector<2x128xf32>
    %21 = math.tanh %15 : vector<2x128xf32>
    %22 = vector.extract_strided_slice %20 {offsets = [0, 32], sizes = [2, 32], strides = [1, 1]} : vector<2x128xf32> to vector<2x32xf32>
    %23 = arith.mulf %22, %14 : vector<2x32xf32>
    %24 = vector.extract_strided_slice %20 {offsets = [0, 0], sizes = [2, 32], strides = [1, 1]} : vector<2x128xf32> to vector<2x32xf32>
    %25 = vector.extract_strided_slice %21 {offsets = [0, 96], sizes = [2, 32], strides = [1, 1]} : vector<2x128xf32> to vector<2x32xf32>
    %26 = arith.mulf %24, %25 : vector<2x32xf32>
    %27 = arith.addf %23, %26 : vector<2x32xf32>
    %28 = vector.extract_strided_slice %20 {offsets = [0, 64], sizes = [2, 32], strides = [1, 1]} : vector<2x128xf32> to vector<2x32xf32>
    %29 = math.tanh %27 : vector<2x32xf32>
    %30 = arith.mulf %28, %29 : vector<2x32xf32>
    %31 = tpu.concatenate %30, %14 in 1 : vector<2x32xf32>, vector<2x32xf32> -> vector<2x64xf32>
    %cst_18 = arith.constant dense<0.000000e+00> : vector<2x256xf32>
    %32 = tpu.matmul %31, %12, %cst_18 {dimension_numbers = #tpu.dot_dimension_numbers<[1], [0], [0], [1], [0, 0, 1, 1], [], []>} : vector<2x64xf32>, vector<64x256xf32>, vector<2x256xf32> -> vector<2x256xf32>
    %33 = vector.extract_strided_slice %32 {offsets = [0, 128], sizes = [2, 128], strides = [1, 1]} : vector<2x256xf32> to vector<2x128xf32>
    %34 = vector.broadcast %13 : vector<1x128xf32> to vector<2x128xf32>
    %35 = arith.addf %33, %34 : vector<2x128xf32>
    %36 = arith.negf %35 : vector<2x128xf32>
    %37 = math.exp %36 : vector<2x128xf32>
    %cst_19 = arith.constant 1.000000e+00 : f32
    %38 = vector.broadcast %cst_19 : f32 to vector<2x128xf32>
    %39 = arith.addf %38, %37 : vector<2x128xf32>
    %40 = arith.divf %38, %39 : vector<2x128xf32>
    %41 = math.tanh %35 : vector<2x128xf32>
    %42 = vector.extract_strided_slice %40 {offsets = [0, 32], sizes = [2, 32], strides = [1, 1]} : vector<2x128xf32> to vector<2x32xf32>
    %43 = arith.mulf %42, %14 : vector<2x32xf32>
    %44 = vector.extract_strided_slice %40 {offsets = [0, 0], sizes = [2, 32], strides = [1, 1]} : vector<2x128xf32> to vector<2x32xf32>
    %45 = vector.extract_strided_slice %41 {offsets = [0, 96], sizes = [2, 32], strides = [1, 1]} : vector<2x128xf32> to vector<2x32xf32>
    %46 = arith.mulf %44, %45 : vector<2x32xf32>
    %47 = arith.addf %43, %46 : vector<2x32xf32>
    %48 = vector.extract_strided_slice %40 {offsets = [0, 64], sizes = [2, 32], strides = [1, 1]} : vector<2x128xf32> to vector<2x32xf32>
    %49 = math.tanh %47 : vector<2x32xf32>
    %50 = arith.mulf %48, %49 : vector<2x32xf32>
    %51 = vector.extract_strided_slice %11 {offsets = [0, 128], sizes = [2, 128], strides = [1, 1]} : vector<2x1024xf32> to vector<2x128xf32>
    %52 = vector.extract_strided_slice %32 {offsets = [0, 0], sizes = [2, 128], strides = [1, 1]} : vector<2x256xf32> to vector<2x128xf32>
    %53 = arith.addf %51, %52 : vector<2x128xf32>
    %54 = arith.negf %53 : vector<2x128xf32>
    %55 = math.exp %54 : vector<2x128xf32>
    %cst_20 = arith.constant 1.000000e+00 : f32
    %56 = vector.broadcast %cst_20 : f32 to vector<2x128xf32>
    %57 = arith.addf %56, %55 : vector<2x128xf32>
    %58 = arith.divf %56, %57 : vector<2x128xf32>
    %59 = math.tanh %53 : vector<2x128xf32>
    %60 = vector.extract_strided_slice %58 {offsets = [0, 32], sizes = [2, 32], strides = [1, 1]} : vector<2x128xf32> to vector<2x32xf32>
    %61 = arith.mulf %60, %27 : vector<2x32xf32>
    %62 = vector.extract_strided_slice %58 {offsets = [0, 0], sizes = [2, 32], strides = [1, 1]} : vector<2x128xf32> to vector<2x32xf32>
    %63 = vector.extract_strided_slice %59 {offsets = [0, 96], sizes = [2, 32], strides = [1, 1]} : vector<2x128xf32> to vector<2x32xf32>
    %64 = arith.mulf %62, %63 : vector<2x32xf32>
    %65 = arith.addf %61, %64 : vector<2x32xf32>
    %66 = vector.extract_strided_slice %58 {offsets = [0, 64], sizes = [2, 32], strides = [1, 1]} : vector<2x128xf32> to vector<2x32xf32>
    %67 = math.tanh %65 : vector<2x32xf32>
    %68 = arith.mulf %66, %67 : vector<2x32xf32>
    %69 = tpu.concatenate %68, %50 in 1 : vector<2x32xf32>, vector<2x32xf32> -> vector<2x64xf32>
    %cst_21 = arith.constant dense<0.000000e+00> : vector<2x256xf32>
    %70 = tpu.matmul %69, %12, %cst_21 {dimension_numbers = #tpu.dot_dimension_numbers<[1], [0], [0], [1], [0, 0, 1, 1], [], []>} : vector<2x64xf32>, vector<64x256xf32>, vector<2x256xf32> -> vector<2x256xf32>
    %71 = vector.extract_strided_slice %70 {offsets = [0, 128], sizes = [2, 128], strides = [1, 1]} : vector<2x256xf32> to vector<2x128xf32>
    %72 = vector.broadcast %13 : vector<1x128xf32> to vector<2x128xf32>
    %73 = arith.addf %71, %72 : vector<2x128xf32>
    %74 = arith.negf %73 : vector<2x128xf32>
    %75 = math.exp %74 : vector<2x128xf32>
    %cst_22 = arith.constant 1.000000e+00 : f32
    %76 = vector.broadcast %cst_22 : f32 to vector<2x128xf32>
    %77 = arith.addf %76, %75 : vector<2x128xf32>
    %78 = arith.divf %76, %77 : vector<2x128xf32>
    %79 = math.tanh %73 : vector<2x128xf32>
    %80 = vector.extract_strided_slice %78 {offsets = [0, 32], sizes = [2, 32], strides = [1, 1]} : vector<2x128xf32> to vector<2x32xf32>
    %81 = arith.mulf %80, %47 : vector<2x32xf32>
    %82 = vector.extract_strided_slice %78 {offsets = [0, 0], sizes = [2, 32], strides = [1, 1]} : vector<2x128xf32> to vector<2x32xf32>
    %83 = vector.extract_strided_slice %79 {offsets = [0, 96], sizes = [2, 32], strides = [1, 1]} : vector<2x128xf32> to vector<2x32xf32>
    %84 = arith.mulf %82, %83 : vector<2x32xf32>
    %85 = arith.addf %81, %84 : vector<2x32xf32>
    %86 = vector.extract_strided_slice %78 {offsets = [0, 64], sizes = [2, 32], strides = [1, 1]} : vector<2x128xf32> to vector<2x32xf32>
    %87 = math.tanh %85 : vector<2x32xf32>
    %88 = arith.mulf %86, %87 : vector<2x32xf32>
    %89 = vector.extract_strided_slice %11 {offsets = [0, 256], sizes = [2, 128], strides = [1, 1]} : vector<2x1024xf32> to vector<2x128xf32>
    %90 = vector.extract_strided_slice %70 {offsets = [0, 0], sizes = [2, 128], strides = [1, 1]} : vector<2x256xf32> to vector<2x128xf32>
    %91 = arith.addf %89, %90 : vector<2x128xf32>
    %92 = arith.negf %91 : vector<2x128xf32>
    %93 = math.exp %92 : vector<2x128xf32>
    %cst_23 = arith.constant 1.000000e+00 : f32
    %94 = vector.broadcast %cst_23 : f32 to vector<2x128xf32>
    %95 = arith.addf %94, %93 : vector<2x128xf32>
    %96 = arith.divf %94, %95 : vector<2x128xf32>
    %97 = math.tanh %91 : vector<2x128xf32>
    %98 = vector.extract_strided_slice %96 {offsets = [0, 32], sizes = [2, 32], strides = [1, 1]} : vector<2x128xf32> to vector<2x32xf32>
    %99 = arith.mulf %98, %65 : vector<2x32xf32>
    %100 = vector.extract_strided_slice %96 {offsets = [0, 0], sizes = [2, 32], strides = [1, 1]} : vector<2x128xf32> to vector<2x32xf32>
    %101 = vector.extract_strided_slice %97 {offsets = [0, 96], sizes = [2, 32], strides = [1, 1]} : vector<2x128xf32> to vector<2x32xf32>
    %102 = arith.mulf %100, %101 : vector<2x32xf32>
    %103 = arith.addf %99, %102 : vector<2x32xf32>
    %104 = vector.extract_strided_slice %96 {offsets = [0, 64], sizes = [2, 32], strides = [1, 1]} : vector<2x128xf32> to vector<2x32xf32>
    %105 = math.tanh %103 : vector<2x32xf32>
    %106 = arith.mulf %104, %105 : vector<2x32xf32>
    %107 = tpu.concatenate %106, %88 in 1 : vector<2x32xf32>, vector<2x32xf32> -> vector<2x64xf32>
    %cst_24 = arith.constant dense<0.000000e+00> : vector<2x256xf32>
    %108 = tpu.matmul %107, %12, %cst_24 {dimension_numbers = #tpu.dot_dimension_numbers<[1], [0], [0], [1], [0, 0, 1, 1], [], []>} : vector<2x64xf32>, vector<64x256xf32>, vector<2x256xf32> -> vector<2x256xf32>
    %109 = vector.extract_strided_slice %108 {offsets = [0, 128], sizes = [2, 128], strides = [1, 1]} : vector<2x256xf32> to vector<2x128xf32>
    %110 = vector.broadcast %13 : vector<1x128xf32> to vector<2x128xf32>
    %111 = arith.addf %109, %110 : vector<2x128xf32>
    %112 = arith.negf %111 : vector<2x128xf32>
    %113 = math.exp %112 : vector<2x128xf32>
    %cst_25 = arith.constant 1.000000e+00 : f32
    %114 = vector.broadcast %cst_25 : f32 to vector<2x128xf32>
    %115 = arith.addf %114, %113 : vector<2x128xf32>
    %116 = arith.divf %114, %115 : vector<2x128xf32>
    %117 = math.tanh %111 : vector<2x128xf32>
    %118 = vector.extract_strided_slice %116 {offsets = [0, 32], sizes = [2, 32], strides = [1, 1]} : vector<2x128xf32> to vector<2x32xf32>
    %119 = arith.mulf %118, %85 : vector<2x32xf32>
    %120 = vector.extract_strided_slice %116 {offsets = [0, 0], sizes = [2, 32], strides = [1, 1]} : vector<2x128xf32> to vector<2x32xf32>
    %121 = vector.extract_strided_slice %117 {offsets = [0, 96], sizes = [2, 32], strides = [1, 1]} : vector<2x128xf32> to vector<2x32xf32>
    %122 = arith.mulf %120, %121 : vector<2x32xf32>
    %123 = arith.addf %119, %122 : vector<2x32xf32>
    %124 = vector.extract_strided_slice %116 {offsets = [0, 64], sizes = [2, 32], strides = [1, 1]} : vector<2x128xf32> to vector<2x32xf32>
    %125 = math.tanh %123 : vector<2x32xf32>
    %126 = arith.mulf %124, %125 : vector<2x32xf32>
    %127 = vector.extract_strided_slice %11 {offsets = [0, 384], sizes = [2, 128], strides = [1, 1]} : vector<2x1024xf32> to vector<2x128xf32>
    %128 = vector.extract_strided_slice %108 {offsets = [0, 0], sizes = [2, 128], strides = [1, 1]} : vector<2x256xf32> to vector<2x128xf32>
    %129 = arith.addf %127, %128 : vector<2x128xf32>
    %130 = arith.negf %129 : vector<2x128xf32>
    %131 = math.exp %130 : vector<2x128xf32>
    %cst_26 = arith.constant 1.000000e+00 : f32
    %132 = vector.broadcast %cst_26 : f32 to vector<2x128xf32>
    %133 = arith.addf %132, %131 : vector<2x128xf32>
    %134 = arith.divf %132, %133 : vector<2x128xf32>
    %135 = math.tanh %129 : vector<2x128xf32>
    %136 = vector.extract_strided_slice %134 {offsets = [0, 32], sizes = [2, 32], strides = [1, 1]} : vector<2x128xf32> to vector<2x32xf32>
    %137 = arith.mulf %136, %103 : vector<2x32xf32>
    %138 = vector.extract_strided_slice %134 {offsets = [0, 0], sizes = [2, 32], strides = [1, 1]} : vector<2x128xf32> to vector<2x32xf32>
    %139 = vector.extract_strided_slice %135 {offsets = [0, 96], sizes = [2, 32], strides = [1, 1]} : vector<2x128xf32> to vector<2x32xf32>
    %140 = arith.mulf %138, %139 : vector<2x32xf32>
    %141 = arith.addf %137, %140 : vector<2x32xf32>
    %142 = vector.extract_strided_slice %134 {offsets = [0, 64], sizes = [2, 32], strides = [1, 1]} : vector<2x128xf32> to vector<2x32xf32>
    %143 = math.tanh %141 : vector<2x32xf32>
    %144 = arith.mulf %142, %143 : vector<2x32xf32>
    %145 = tpu.concatenate %144, %126 in 1 : vector<2x32xf32>, vector<2x32xf32> -> vector<2x64xf32>
    %cst_27 = arith.constant dense<0.000000e+00> : vector<2x256xf32>
    %146 = tpu.matmul %145, %12, %cst_27 {dimension_numbers = #tpu.dot_dimension_numbers<[1], [0], [0], [1], [0, 0, 1, 1], [], []>} : vector<2x64xf32>, vector<64x256xf32>, vector<2x256xf32> -> vector<2x256xf32>
    %147 = vector.extract_strided_slice %146 {offsets = [0, 128], sizes = [2, 128], strides = [1, 1]} : vector<2x256xf32> to vector<2x128xf32>
    %148 = vector.broadcast %13 : vector<1x128xf32> to vector<2x128xf32>
    %149 = arith.addf %147, %148 : vector<2x128xf32>
    %150 = arith.negf %149 : vector<2x128xf32>
    %151 = math.exp %150 : vector<2x128xf32>
    %cst_28 = arith.constant 1.000000e+00 : f32
    %152 = vector.broadcast %cst_28 : f32 to vector<2x128xf32>
    %153 = arith.addf %152, %151 : vector<2x128xf32>
    %154 = arith.divf %152, %153 : vector<2x128xf32>
    %155 = math.tanh %149 : vector<2x128xf32>
    %156 = vector.extract_strided_slice %154 {offsets = [0, 32], sizes = [2, 32], strides = [1, 1]} : vector<2x128xf32> to vector<2x32xf32>
    %157 = arith.mulf %156, %123 : vector<2x32xf32>
    %158 = vector.extract_strided_slice %154 {offsets = [0, 0], sizes = [2, 32], strides = [1, 1]} : vector<2x128xf32> to vector<2x32xf32>
    %159 = vector.extract_strided_slice %155 {offsets = [0, 96], sizes = [2, 32], strides = [1, 1]} : vector<2x128xf32> to vector<2x32xf32>
    %160 = arith.mulf %158, %159 : vector<2x32xf32>
    %161 = arith.addf %157, %160 : vector<2x32xf32>
    %162 = vector.extract_strided_slice %154 {offsets = [0, 64], sizes = [2, 32], strides = [1, 1]} : vector<2x128xf32> to vector<2x32xf32>
    %163 = math.tanh %161 : vector<2x32xf32>
    %164 = arith.mulf %162, %163 : vector<2x32xf32>
    %165 = vector.extract_strided_slice %11 {offsets = [0, 512], sizes = [2, 128], strides = [1, 1]} : vector<2x1024xf32> to vector<2x128xf32>
    %166 = vector.extract_strided_slice %146 {offsets = [0, 0], sizes = [2, 128], strides = [1, 1]} : vector<2x256xf32> to vector<2x128xf32>
    %167 = arith.addf %165, %166 : vector<2x128xf32>
    %168 = arith.negf %167 : vector<2x128xf32>
    %169 = math.exp %168 : vector<2x128xf32>
    %cst_29 = arith.constant 1.000000e+00 : f32
    %170 = vector.broadcast %cst_29 : f32 to vector<2x128xf32>
    %171 = arith.addf %170, %169 : vector<2x128xf32>
    %172 = arith.divf %170, %171 : vector<2x128xf32>
    %173 = math.tanh %167 : vector<2x128xf32>
    %174 = vector.extract_strided_slice %172 {offsets = [0, 32], sizes = [2, 32], strides = [1, 1]} : vector<2x128xf32> to vector<2x32xf32>
    %175 = arith.mulf %174, %141 : vector<2x32xf32>
    %176 = vector.extract_strided_slice %172 {offsets = [0, 0], sizes = [2, 32], strides = [1, 1]} : vector<2x128xf32> to vector<2x32xf32>
    %177 = vector.extract_strided_slice %173 {offsets = [0, 96], sizes = [2, 32], strides = [1, 1]} : vector<2x128xf32> to vector<2x32xf32>
    %178 = arith.mulf %176, %177 : vector<2x32xf32>
    %179 = arith.addf %175, %178 : vector<2x32xf32>
    %180 = vector.extract_strided_slice %172 {offsets = [0, 64], sizes = [2, 32], strides = [1, 1]} : vector<2x128xf32> to vector<2x32xf32>
    %181 = math.tanh %179 : vector<2x32xf32>
    %182 = arith.mulf %180, %181 : vector<2x32xf32>
    %183 = tpu.concatenate %182, %164 in 1 : vector<2x32xf32>, vector<2x32xf32> -> vector<2x64xf32>
    %cst_30 = arith.constant dense<0.000000e+00> : vector<2x256xf32>
    %184 = tpu.matmul %183, %12, %cst_30 {dimension_numbers = #tpu.dot_dimension_numbers<[1], [0], [0], [1], [0, 0, 1, 1], [], []>} : vector<2x64xf32>, vector<64x256xf32>, vector<2x256xf32> -> vector<2x256xf32>
    %185 = vector.extract_strided_slice %184 {offsets = [0, 128], sizes = [2, 128], strides = [1, 1]} : vector<2x256xf32> to vector<2x128xf32>
    %186 = vector.broadcast %13 : vector<1x128xf32> to vector<2x128xf32>
    %187 = arith.addf %185, %186 : vector<2x128xf32>
    %188 = arith.negf %187 : vector<2x128xf32>
    %189 = math.exp %188 : vector<2x128xf32>
    %cst_31 = arith.constant 1.000000e+00 : f32
    %190 = vector.broadcast %cst_31 : f32 to vector<2x128xf32>
    %191 = arith.addf %190, %189 : vector<2x128xf32>
    %192 = arith.divf %190, %191 : vector<2x128xf32>
    %193 = math.tanh %187 : vector<2x128xf32>
    %194 = vector.extract_strided_slice %192 {offsets = [0, 32], sizes = [2, 32], strides = [1, 1]} : vector<2x128xf32> to vector<2x32xf32>
    %195 = arith.mulf %194, %161 : vector<2x32xf32>
    %196 = vector.extract_strided_slice %192 {offsets = [0, 0], sizes = [2, 32], strides = [1, 1]} : vector<2x128xf32> to vector<2x32xf32>
    %197 = vector.extract_strided_slice %193 {offsets = [0, 96], sizes = [2, 32], strides = [1, 1]} : vector<2x128xf32> to vector<2x32xf32>
    %198 = arith.mulf %196, %197 : vector<2x32xf32>
    %199 = arith.addf %195, %198 : vector<2x32xf32>
    %200 = vector.extract_strided_slice %192 {offsets = [0, 64], sizes = [2, 32], strides = [1, 1]} : vector<2x128xf32> to vector<2x32xf32>
    %201 = math.tanh %199 : vector<2x32xf32>
    %202 = arith.mulf %200, %201 : vector<2x32xf32>
    %203 = vector.extract_strided_slice %11 {offsets = [0, 640], sizes = [2, 128], strides = [1, 1]} : vector<2x1024xf32> to vector<2x128xf32>
    %204 = vector.extract_strided_slice %184 {offsets = [0, 0], sizes = [2, 128], strides = [1, 1]} : vector<2x256xf32> to vector<2x128xf32>
    %205 = arith.addf %203, %204 : vector<2x128xf32>
    %206 = arith.negf %205 : vector<2x128xf32>
    %207 = math.exp %206 : vector<2x128xf32>
    %cst_32 = arith.constant 1.000000e+00 : f32
    %208 = vector.broadcast %cst_32 : f32 to vector<2x128xf32>
    %209 = arith.addf %208, %207 : vector<2x128xf32>
    %210 = arith.divf %208, %209 : vector<2x128xf32>
    %211 = math.tanh %205 : vector<2x128xf32>
    %212 = vector.extract_strided_slice %210 {offsets = [0, 32], sizes = [2, 32], strides = [1, 1]} : vector<2x128xf32> to vector<2x32xf32>
    %213 = arith.mulf %212, %179 : vector<2x32xf32>
    %214 = vector.extract_strided_slice %210 {offsets = [0, 0], sizes = [2, 32], strides = [1, 1]} : vector<2x128xf32> to vector<2x32xf32>
    %215 = vector.extract_strided_slice %211 {offsets = [0, 96], sizes = [2, 32], strides = [1, 1]} : vector<2x128xf32> to vector<2x32xf32>
    %216 = arith.mulf %214, %215 : vector<2x32xf32>
    %217 = arith.addf %213, %216 : vector<2x32xf32>
    %218 = vector.extract_strided_slice %210 {offsets = [0, 64], sizes = [2, 32], strides = [1, 1]} : vector<2x128xf32> to vector<2x32xf32>
    %219 = math.tanh %217 : vector<2x32xf32>
    %220 = arith.mulf %218, %219 : vector<2x32xf32>
    %221 = tpu.concatenate %220, %202 in 1 : vector<2x32xf32>, vector<2x32xf32> -> vector<2x64xf32>
    %cst_33 = arith.constant dense<0.000000e+00> : vector<2x256xf32>
    %222 = tpu.matmul %221, %12, %cst_33 {dimension_numbers = #tpu.dot_dimension_numbers<[1], [0], [0], [1], [0, 0, 1, 1], [], []>} : vector<2x64xf32>, vector<64x256xf32>, vector<2x256xf32> -> vector<2x256xf32>
    %223 = vector.extract_strided_slice %222 {offsets = [0, 128], sizes = [2, 128], strides = [1, 1]} : vector<2x256xf32> to vector<2x128xf32>
    %224 = vector.broadcast %13 : vector<1x128xf32> to vector<2x128xf32>
    %225 = arith.addf %223, %224 : vector<2x128xf32>
    %226 = arith.negf %225 : vector<2x128xf32>
    %227 = math.exp %226 : vector<2x128xf32>
    %cst_34 = arith.constant 1.000000e+00 : f32
    %228 = vector.broadcast %cst_34 : f32 to vector<2x128xf32>
    %229 = arith.addf %228, %227 : vector<2x128xf32>
    %230 = arith.divf %228, %229 : vector<2x128xf32>
    %231 = math.tanh %225 : vector<2x128xf32>
    %232 = vector.extract_strided_slice %230 {offsets = [0, 32], sizes = [2, 32], strides = [1, 1]} : vector<2x128xf32> to vector<2x32xf32>
    %233 = arith.mulf %232, %199 : vector<2x32xf32>
    %234 = vector.extract_strided_slice %230 {offsets = [0, 0], sizes = [2, 32], strides = [1, 1]} : vector<2x128xf32> to vector<2x32xf32>
    %235 = vector.extract_strided_slice %231 {offsets = [0, 96], sizes = [2, 32], strides = [1, 1]} : vector<2x128xf32> to vector<2x32xf32>
    %236 = arith.mulf %234, %235 : vector<2x32xf32>
    %237 = arith.addf %233, %236 : vector<2x32xf32>
    %238 = vector.extract_strided_slice %230 {offsets = [0, 64], sizes = [2, 32], strides = [1, 1]} : vector<2x128xf32> to vector<2x32xf32>
    %239 = math.tanh %237 : vector<2x32xf32>
    %240 = arith.mulf %238, %239 : vector<2x32xf32>
    %241 = vector.extract_strided_slice %11 {offsets = [0, 768], sizes = [2, 128], strides = [1, 1]} : vector<2x1024xf32> to vector<2x128xf32>
    %242 = vector.extract_strided_slice %222 {offsets = [0, 0], sizes = [2, 128], strides = [1, 1]} : vector<2x256xf32> to vector<2x128xf32>
    %243 = arith.addf %241, %242 : vector<2x128xf32>
    %244 = arith.negf %243 : vector<2x128xf32>
    %245 = math.exp %244 : vector<2x128xf32>
    %cst_35 = arith.constant 1.000000e+00 : f32
    %246 = vector.broadcast %cst_35 : f32 to vector<2x128xf32>
    %247 = arith.addf %246, %245 : vector<2x128xf32>
    %248 = arith.divf %246, %247 : vector<2x128xf32>
    %249 = math.tanh %243 : vector<2x128xf32>
    %250 = vector.extract_strided_slice %248 {offsets = [0, 32], sizes = [2, 32], strides = [1, 1]} : vector<2x128xf32> to vector<2x32xf32>
    %251 = arith.mulf %250, %217 : vector<2x32xf32>
    %252 = vector.extract_strided_slice %248 {offsets = [0, 0], sizes = [2, 32], strides = [1, 1]} : vector<2x128xf32> to vector<2x32xf32>
    %253 = vector.extract_strided_slice %249 {offsets = [0, 96], sizes = [2, 32], strides = [1, 1]} : vector<2x128xf32> to vector<2x32xf32>
    %254 = arith.mulf %252, %253 : vector<2x32xf32>
    %255 = arith.addf %251, %254 : vector<2x32xf32>
    %256 = vector.extract_strided_slice %248 {offsets = [0, 64], sizes = [2, 32], strides = [1, 1]} : vector<2x128xf32> to vector<2x32xf32>
    %257 = math.tanh %255 : vector<2x32xf32>
    %258 = arith.mulf %256, %257 : vector<2x32xf32>
    %259 = tpu.concatenate %258, %240 in 1 : vector<2x32xf32>, vector<2x32xf32> -> vector<2x64xf32>
    %cst_36 = arith.constant dense<0.000000e+00> : vector<2x256xf32>
    %260 = tpu.matmul %259, %12, %cst_36 {dimension_numbers = #tpu.dot_dimension_numbers<[1], [0], [0], [1], [0, 0, 1, 1], [], []>} : vector<2x64xf32>, vector<64x256xf32>, vector<2x256xf32> -> vector<2x256xf32>
    %261 = vector.extract_strided_slice %260 {offsets = [0, 128], sizes = [2, 128], strides = [1, 1]} : vector<2x256xf32> to vector<2x128xf32>
    %262 = vector.broadcast %13 : vector<1x128xf32> to vector<2x128xf32>
    %263 = arith.addf %261, %262 : vector<2x128xf32>
    %264 = arith.negf %263 : vector<2x128xf32>
    %265 = math.exp %264 : vector<2x128xf32>
    %cst_37 = arith.constant 1.000000e+00 : f32
    %266 = vector.broadcast %cst_37 : f32 to vector<2x128xf32>
    %267 = arith.addf %266, %265 : vector<2x128xf32>
    %268 = arith.divf %266, %267 : vector<2x128xf32>
    %269 = math.tanh %263 : vector<2x128xf32>
    %270 = vector.extract_strided_slice %268 {offsets = [0, 32], sizes = [2, 32], strides = [1, 1]} : vector<2x128xf32> to vector<2x32xf32>
    %271 = arith.mulf %270, %237 : vector<2x32xf32>
    %272 = vector.extract_strided_slice %268 {offsets = [0, 0], sizes = [2, 32], strides = [1, 1]} : vector<2x128xf32> to vector<2x32xf32>
    %273 = vector.extract_strided_slice %269 {offsets = [0, 96], sizes = [2, 32], strides = [1, 1]} : vector<2x128xf32> to vector<2x32xf32>
    %274 = arith.mulf %272, %273 : vector<2x32xf32>
    %275 = arith.addf %271, %274 : vector<2x32xf32>
    %276 = vector.extract_strided_slice %268 {offsets = [0, 64], sizes = [2, 32], strides = [1, 1]} : vector<2x128xf32> to vector<2x32xf32>
    %277 = math.tanh %275 : vector<2x32xf32>
    %278 = arith.mulf %276, %277 : vector<2x32xf32>
    %279 = vector.extract_strided_slice %11 {offsets = [0, 896], sizes = [2, 128], strides = [1, 1]} : vector<2x1024xf32> to vector<2x128xf32>
    %280 = vector.extract_strided_slice %260 {offsets = [0, 0], sizes = [2, 128], strides = [1, 1]} : vector<2x256xf32> to vector<2x128xf32>
    %281 = arith.addf %279, %280 : vector<2x128xf32>
    %282 = arith.negf %281 : vector<2x128xf32>
    %283 = math.exp %282 : vector<2x128xf32>
    %cst_38 = arith.constant 1.000000e+00 : f32
    %284 = vector.broadcast %cst_38 : f32 to vector<2x128xf32>
    %285 = arith.addf %284, %283 : vector<2x128xf32>
    %286 = arith.divf %284, %285 : vector<2x128xf32>
    %287 = math.tanh %281 : vector<2x128xf32>
    %288 = vector.extract_strided_slice %286 {offsets = [0, 32], sizes = [2, 32], strides = [1, 1]} : vector<2x128xf32> to vector<2x32xf32>
    %289 = arith.mulf %288, %255 : vector<2x32xf32>
    %290 = vector.extract_strided_slice %286 {offsets = [0, 0], sizes = [2, 32], strides = [1, 1]} : vector<2x128xf32> to vector<2x32xf32>
    %291 = vector.extract_strided_slice %287 {offsets = [0, 96], sizes = [2, 32], strides = [1, 1]} : vector<2x128xf32> to vector<2x32xf32>
    %292 = arith.mulf %290, %291 : vector<2x32xf32>
    %293 = arith.addf %289, %292 : vector<2x32xf32>
    %294 = vector.extract_strided_slice %286 {offsets = [0, 64], sizes = [2, 32], strides = [1, 1]} : vector<2x128xf32> to vector<2x32xf32>
    %295 = math.tanh %293 : vector<2x32xf32>
    %296 = arith.mulf %294, %295 : vector<2x32xf32>
    %297 = tpu.concatenate %296, %278 in 1 : vector<2x32xf32>, vector<2x32xf32> -> vector<2x64xf32>
    %cst_39 = arith.constant dense<0.000000e+00> : vector<2x256xf32>
    %298 = tpu.matmul %297, %12, %cst_39 {dimension_numbers = #tpu.dot_dimension_numbers<[1], [0], [0], [1], [0, 0, 1, 1], [], []>} : vector<2x64xf32>, vector<64x256xf32>, vector<2x256xf32> -> vector<2x256xf32>
    %299 = vector.extract_strided_slice %298 {offsets = [0, 128], sizes = [2, 128], strides = [1, 1]} : vector<2x256xf32> to vector<2x128xf32>
    %300 = vector.broadcast %13 : vector<1x128xf32> to vector<2x128xf32>
    %301 = arith.addf %299, %300 : vector<2x128xf32>
    %302 = arith.negf %301 : vector<2x128xf32>
    %303 = math.exp %302 : vector<2x128xf32>
    %cst_40 = arith.constant 1.000000e+00 : f32
    %304 = vector.broadcast %cst_40 : f32 to vector<2x128xf32>
    %305 = arith.addf %304, %303 : vector<2x128xf32>
    %306 = arith.divf %304, %305 : vector<2x128xf32>
    %307 = math.tanh %301 : vector<2x128xf32>
    %308 = vector.extract_strided_slice %306 {offsets = [0, 32], sizes = [2, 32], strides = [1, 1]} : vector<2x128xf32> to vector<2x32xf32>
    %309 = arith.mulf %308, %275 : vector<2x32xf32>
    %310 = vector.extract_strided_slice %306 {offsets = [0, 0], sizes = [2, 32], strides = [1, 1]} : vector<2x128xf32> to vector<2x32xf32>
    %311 = vector.extract_strided_slice %307 {offsets = [0, 96], sizes = [2, 32], strides = [1, 1]} : vector<2x128xf32> to vector<2x32xf32>
    %312 = arith.mulf %310, %311 : vector<2x32xf32>
    %313 = arith.addf %309, %312 : vector<2x32xf32>
    %314 = vector.extract_strided_slice %306 {offsets = [0, 64], sizes = [2, 32], strides = [1, 1]} : vector<2x128xf32> to vector<2x32xf32>
    %315 = math.tanh %313 : vector<2x32xf32>
    %316 = arith.mulf %314, %315 : vector<2x32xf32>
    %317 = tpu.concatenate %50, %88, %126, %164, %202, %240, %278, %316 in 1 : vector<2x32xf32>, vector<2x32xf32>, vector<2x32xf32>, vector<2x32xf32>, vector<2x32xf32>, vector<2x32xf32>, vector<2x32xf32>, vector<2x32xf32> -> vector<2x256xf32>
    %c0_41 = arith.constant 0 : index
    %c0_42 = arith.constant 0 : index
    %318 = vector.load %arg8[%c0_41, %c0_42] : memref<2x256xf32, #tpu.memory_space<vmem>>, vector<2x256xf32>
    tpu.vector_store %arg8[%c0_41, %c0_42], %317 {strides = array<i32>} : memref<2x256xf32, #tpu.memory_space<vmem>>, vector<2x256xf32>,
    return
  }
}

</mosaic_0001>

<bundles_post_ra>
// kernel: cpc_forward.1
= control target key start
LH: loop header
LB: loop body
LE: loop exit
PB: predicated region body
PF: predicated region fallthrough
CT: control target
= control target key end

     0   :  { %14 = vsyncpa [#allocation3], 0  ;;  %s2384_s0 = inlined_call_operand.vmem [shape: f32[2,32], index: 0, kind: input, shape index: {}]   ;;  %s2385_s1 = inlined_call_operand.hbm [shape: f32[32,256], index: 1, kind: input, shape index: {}]   ;;  %s2386_s2 = inlined_call_operand.vmem [shape: f32[1,256], index: 2, kind: input, shape index: {}]   ;;  %s2387_s3 = inlined_call_operand.hbm [shape: f32[32,1024], index: 3, kind: input, shape index: {}]   ;;  %s2388_s4 = inlined_call_operand.vmem [shape: f32[1,1024], index: 4, kind: input, shape index: {}]   ;;  %s2389_s5 = inlined_call_operand.hbm [shape: f32[64,256], index: 5, kind: input, shape index: {}]   ;;  %s2390_s6 = inlined_call_operand.vmem [shape: f32[1,128], index: 6, kind: input, shape index: {}]   ;;  %s2391_s7 = inlined_call_operand.vmem [shape: f32[2,256], index: 7, kind: output, shape index: {0}]   ;;  %s2392_s8 = inlined_call_operand.vmem [shape: f32[2,256], index: 8, kind: output, shape index: {1}]  }
   0x1   :  { %15 = vsyncpa [#allocation5], 0  ;;  %s1895_s27 = smov [#allocation4]  }
   0x2   :  { %s37_s28 = sshll.u32 %s1895_s27, 4  ;;  %s38_s28 = int_to_ptr.vmem [resolvable:$true] %s37_s28 }
   0x3   :  { %s1839_s29 = scalar_lea.vmem %s38_s28, 4096  ;;  %p1844_p1 = scmp.lt.s32.totalorder %s38_s28, %s38_s28 }
   0x4   :  { %p1840_p0 = scmp.ne.s32.totalorder %s38_s28, %s1839_s29  ;;  %p1845_p2 = scmp.lt.s32.totalorder %s1839_s29, %s1839_s29 }
   0x6   :  { %p1846_p3 = por %p1845_p2, %p1844_p1 }
   0x8   :  { %p1847_p4 = pnand %p1846_p3, %p1840_p0 }
   0xa   :  { %1850 = shalt.err (!%p1847_p4)
}
   0xb   :  { %s1896_s30 = smov 1024   ;;  %s1897_s9 = smov 64  }
   0xc   :  { %43 = dma.hbm_to_vmem [thread:$0]  %s2387_s3, 4096, %s38_s28, [#allocation5], %s1896_s30, %s1896_s30, %s1897_s9  }
   0xd   :  { %s1898_s12 = smov [#allocation2]  }
   0xe   :  { %s23_s13 = sshll.u32 %s1898_s12, 4  ;;  %s24_s13 = int_to_ptr.vmem [resolvable:$true] %s23_s13 }
   0xf   :  { %s1859_s14 = scalar_lea.vmem %s24_s13, 1024  ;;  %p1864_p6 = scmp.lt.s32.totalorder %s24_s13, %s24_s13 }
  0x10   :  { %p1860_p5 = scmp.ne.s32.totalorder %s24_s13, %s1859_s14  ;;  %p1865_p7 = scmp.lt.s32.totalorder %s1859_s14, %s1859_s14 }
  0x12   :  { %p1866_p8 = por %p1865_p7, %p1864_p6 }
  0x14   :  { %p1867_p9 = pnand %p1866_p8, %p1860_p5 }
  0x16   :  { %1870 = shalt.err (!%p1867_p9)
}
  0x17   :  { %s1899_s15 = smov 256   ;;  %s1900_s16 = smov 16  }
  0x18   :  { %29 = dma.hbm_to_vmem [thread:$0]  %s2385_s1, 1024, %s24_s13, [#allocation3], %s1899_s15, %s1899_s15, %s1900_s16  }
  0x19   :  { %s1901_s19 = smov [#allocation6]  }
  0x1a   :  { %s51_s20 = sshll.u32 %s1901_s19, 4  ;;  %s52_s20 = int_to_ptr.vmem [resolvable:$true] %s51_s20 }
  0x1b   :  { %s1879_s3 = scalar_lea.vmem %s52_s20, 2048  ;;  %p1884_p11 = scmp.lt.s32.totalorder %s52_s20, %s52_s20 }
  0x1c   :  { %p1880_p10 = scmp.ne.s32.totalorder %s52_s20, %s1879_s3  ;;  %p1885_p12 = scmp.lt.s32.totalorder %s1879_s3, %s1879_s3 }
  0x1e   :  { %p1886_p13 = por %p1885_p12, %p1884_p11 }
  0x20   :  { %p1887_p0 = pnand %p1886_p13, %p1880_p10 }
  0x22   :  { %1890 = shalt.err (!%p1887_p0)
}
  0x23   :  { %57 = dma.hbm_to_vmem [thread:$0]  %s2389_s5, 2048, %s52_s20, [#allocation5], %s1899_s15, %s1899_s15, %s1900_s16  }
  0x24   :  { %1891 = dma.done.wait [#allocation3], 1024  }
  0x25   :  { %1892 = vsyncadd [#allocation3], 4294966272 }
  0x26   :  { %1893 = dma.done.wait [#allocation5], 6144  }
  0x27   :  { %1894 = vsyncadd [#allocation5], 4294961152  ;;  %v1902_v0 = vmov 0.0   ;;  %v202_v1 = vld [vmem:[#allocation4 + $0xc8] sm:$0xff]  ;;  %v201_v2 = vld [vmem:[#allocation4 + $0xc0] sm:$0xff]  ;;  %vm90_vm0 = vcmask 261120   ;;  %v80_v10 = vlaneseq }
  0x28   :  { %315 = vmatprep.mubr.f32.mxu1 %v1902_v0  ;;  %158 = vmatprep.mubr.f32.mxu0 %v1902_v0  ;;  %v194_v3 = vld [vmem:[#allocation4 + $0x88] sm:$0xff]  ;;  %v193_v4 = vld [vmem:[#allocation4 + $0x80] sm:$0xff]  ;;  %v1986_v35 = vld [vmem:[#allocation6 + $0x78] sm:$0xff]  ;;  %vm581_vm1 = vcmask 523264   ;;  %s1904_s27 = smov 96   ;;  %vm1632_vm2 = vcmask 785408  }
  0x29   :  { %275 = vmatprep.subr.mxu1 %v202_v1  ;;  %v186_v5 = vld [vmem:[#allocation4 + $0x48] sm:$0xff]  ;;  %v185_v6 = vld [vmem:[#allocation4 + $0x40] sm:$0xff]  ;;  %v1970_v11 = vshrl.u32 %v80_v10, 7  ;;  %v1988_v36 = vld [vmem:[#allocation6 + $0x70] sm:$0xff] }
  0x2a   :  { %276 = vmatpush1.msra.mxu1 %v201_v2  ;;  %v178_v7 = vld [vmem:[#allocation4 + $0x8] sm:$0xff]  ;;  %v177_v8 = vld [vmem:[#allocation4] sm:$0xff]  ;;  %v1998_v40 = vld [vmem:[#allocation6 + $0x58] sm:$0xff] }
  0x2b   :  { %277 = vmatprep.subr.mxu1 %v194_v3  ;;  %v1965_v9 = vld [vmem:[%s2384_s0] sm:$0x3]  ;;  %v82_v12 = vsub.s32 0, %v1970_v11  ;;  %s1903_s0 = smov 32   ;;  %v206_v27 = vld [vmem:[#allocation4 + $0xe8] sm:$0xff]  ;;  %v2003_v41 = vld [vmem:[#allocation6 + $0x50] sm:$0xff] }
  0x2c   :  { %278 = vmatpush1.msra.mxu1 %v193_v4  ;;  %v1976_v13 = vld [vmem:[%s2388_s4] sm:$0xff]  ;;  %v198_v29 = vld [vmem:[#allocation4 + $0xa8] sm:$0xff]  ;;  %v2012_v44 = vld [vmem:[#allocation6 + $0x38] sm:$0xff]  ;;  %v86_v56 = vsub.s32 1, %v1970_v11 }
  0x2d   :  { %279 = vmatprep.subr.mxu1 %v186_v5  ;;  %v214_v14 = vrot.slane %v1976_v13, %v82_v12  ;;  %v205_v28 = vld [vmem:[#allocation4 + $0xe0] sm:$0xff]  ;;  %v190_v31 = vld [vmem:[#allocation4 + $0x68] sm:$0xff]  ;;  %v2015_v45 = vld [vmem:[#allocation6 + $0x30] sm:$0xff] }
  0x2e   :  { %280 = vmatpush1.msra.mxu1 %v185_v6  ;;  %v197_v30 = vld [vmem:[#allocation4 + $0xa0] sm:$0xff]  ;;  %v182_v33 = vld [vmem:[#allocation4 + $0x28] sm:$0xff]  ;;  %v2024_v48 = vld [vmem:[#allocation6 + $0x18] sm:$0xff]  ;;  %v218_v59 = vrot.slane %v1976_v13, %v86_v56 }
  0x2f   :  { %281 = vmatprep.subr.mxu1 %v178_v7  ;;  %v189_v32 = vld [vmem:[#allocation4 + $0x60] sm:$0xff]  ;;  %v1990_v37 = vld [vmem:[#allocation6 + $0x68] sm:$0xff]  ;;  %v2027_v49 = vld [vmem:[#allocation6 + $0x10] sm:$0xff] }
  0x30   :  { %282 = vmatpush1.msra.mxu1 %v177_v8  ;;  %v181_v34 = vld [vmem:[#allocation4 + $0x20] sm:$0xff]  ;;  %v2006_v42 = vld [vmem:[#allocation6 + $0x48] sm:$0xff] }
  0x31   :  { %1661 = vmatmul.mubr.msk.f32.vlgmr.msra.gmra.mxu1 %vm90_vm0, %v1965_v9  ;;  %417 = vmatprep.subr.mxu1 %v206_v27  ;;  %v1995_v38 = vld [vmem:[#allocation6 + $0x60] sm:$0xff]  ;;  %v2018_v46 = vld [vmem:[#allocation6 + $0x28] sm:$0xff] }
  0x32   :  { %457 = vmatprep.mubr.f32.mxu1 %v1902_v0  ;;  %418 = vmatpush1.msra.mxu1 %v205_v28  ;;  %v2009_v43 = vld [vmem:[#allocation6 + $0x40] sm:$0xff]  ;;  %v2030_v50 = vld [vmem:[#allocation6 + $0x8] sm:$0xff] }
  0x33   :  { %419 = vmatprep.subr.mxu1 %v198_v29  ;;  %v2021_v47 = vld [vmem:[#allocation6 + $0x20] sm:$0xff]  ;;  %v77_v29 = vld [vmem:[#allocation2 + $0x38] sm:$0xff] }
  0x34   :  { %420 = vmatpush1.msra.mxu1 %v197_v30  ;;  %v2035_v51 = vld [vmem:[#allocation6] sm:$0xff]  ;;  %v76_v30 = vld [vmem:[#allocation2 + $0x30] sm:$0xff]  ;;  %118 = vmatprep.subr.mxu0 %v77_v29 }
  0x35   :  { %421 = vmatprep.subr.mxu1 %v190_v31  ;;  %v2070_v63 = vld [vmem:[%s2390_s6] ss:$0 sm:$0xff]  ;;  %v75_v31 = vld [vmem:[#allocation2 + $0x28] sm:$0xff]  ;;  %119 = vmatpush1.msra.mxu0 %v76_v30 }
  0x36   :  { %422 = vmatpush1.msra.mxu1 %v189_v32  ;;  %v74_v32 = vld [vmem:[#allocation2 + $0x20] sm:$0xff]  ;;  %120 = vmatprep.subr.mxu0 %v75_v31 }
  0x37   :  { %423 = vmatprep.subr.mxu1 %v182_v33  ;;  %v73_v33 = vld [vmem:[#allocation2 + $0x18] sm:$0xff]  ;;  %121 = vmatpush1.msra.mxu0 %v74_v32 }
  0x38   :  { %424 = vmatpush1.msra.mxu1 %v181_v34  ;;  %v71_v34 = vld [vmem:[#allocation2 + $0x8] sm:$0xff]  ;;  %122 = vmatprep.subr.mxu0 %v73_v33 }
  0x39   :  { %1663 = vmatmul.mubr.msk.f32.vlgmr.msra.gmra.mxu1 %vm90_vm0, %v1965_v9  ;;  %601 = vmatprep.subr.mxu1 %v1986_v35 }
  0x3a   :  { %602 = vmatpush1.msra.mxu1 %v1988_v36  ;;  %649 = vmatprep.mubr.f32.mxu1 %v1902_v0 }
  0x3b   :  { %603 = vmatprep.subr.mxu1 %v1990_v37 }
  0x3c   :  { %604 = vmatpush1.msra.mxu1 %v1995_v38 }
  0x3d   :  { %605 = vmatprep.subr.mxu1 %v1998_v40 }
  0x3e   :  { %606 = vmatpush1.msra.mxu1 %v2003_v41 }
  0x3f   :  { %607 = vmatprep.subr.mxu1 %v2006_v42 }
  0x40   :  { %608 = vmatpush1.msra.mxu1 %v2009_v43 }
  0x41   :  { %609 = vmatprep.subr.mxu1 %v2012_v44 }
  0x42   :  { %610 = vmatpush1.msra.mxu1 %v2015_v45 }
  0x43   :  { %611 = vmatprep.subr.mxu1 %v2018_v46 }
  0x44   :  { %612 = vmatpush1.msra.mxu1 %v2021_v47 }
  0x45   :  { %613 = vmatprep.subr.mxu1 %v2024_v48 }
  0x46   :  { %614 = vmatpush1.msra.mxu1 %v2027_v49 }
  0x47   :  { %615 = vmatprep.subr.mxu1 %v2030_v50 }
  0x48   :  { %616 = vmatpush1.msra.mxu1 %v2035_v51 }
  0x49   :  { %873 = vmatprep.subr.mxu1 %v1986_v35 }
  0xf1   :  { %v317_v15 = vpop.f32.mrf.mxu1 }
  0xf2   :  { %v318_v16 = vadd.f32 %v317_v15, %v214_v14 }
  0xf3   :  { %v319_v57 = vpop.f32.mrf.mxu1 }
  0xf4   :  { %1701 = vtanh.f32 %v318_v16  ;;  %v1665_v18 = vmul.f32 -1.442695, %v318_v16  ;;  %v320_v61 = vadd.f32 %v319_v57, %v218_v59  ;;  %v195_v57 = vld [vmem:[#allocation4 + $0x90] sm:$0xff] }
  0xf6   :  { %1703 = vpow2.f32 %v1665_v18 }
  0xf9   :  { %v2060_v58 = vpop.f32.mrf.mxu1 }
  0xfb   :  { %v2065_v60 = vpop.f32.mrf.mxu1 }
 0x101   :  { %v1702_v17 = vpop.eup %1701 }
 0x102   :  { %561 = vrot.lane.b32.xlu0 %v1702_v17, %s1903_s0 }
 0x103   :  { %v1704_v19 = vpop.eup %1703 }
 0x104   :  { %v555_v20 = vadd.f32 1.0, %v1704_v19 }
 0x106   :  { %1705 = vrcp.f32 %v555_v20 }
 0x113   :  { %v1706_v21 = vpop.eup %1705 }
 0x114   :  { %v559_v24 = vmul.f32 0.0, %v1706_v21 }
 0x174   :  { %v562_v22 = vpop.permute.xlu0 %561 }
 0x175   :  { %v564_v23 = vmul.f32 %v1706_v21, %v562_v22 }
 0x177   :  { %566 = vrot.lane.b32.xlu0 %v564_v23, %s1903_s0 }
 0x1e9   :  { %v567_v25 = vpop.permute.xlu0 %566 }
 0x1ea   :  { %v1983_v26 = vadd.f32 %v567_v25, %v559_v24 }
 0x1ec   :  { %1707 = vtanh.f32 %v1983_v26 }
 0x1f9   :  { %v1708_v39 = vpop.eup %1707 }
 0x1fa   :  { %572 = vrot.lane.b32.xlu1 %v1708_v39, %s1903_s0  ;;  %v70_v39 = vld [vmem:[#allocation2] sm:$0xff] }
 0x26c   :  { %v573_v52 = vpop.permute.xlu1 %572 }
 0x26d   :  { %v575_v53 = vmul.f32 %v1706_v21, %v573_v52  ;;  %v204_v52 = vld [vmem:[#allocation4 + $0xd8] sm:$0xff] }
 0x26f   :  { %577 = vrot.lane.b32.xlu1 %v575_v53, %s1897_s9 }
 0x2e1   :  { %v578_v54 = vpop.permute.xlu1 %577 }
 0x2e2   :  { %v580_v55 = vsel %vm90_vm0, %v578_v54, 0.0  ;;  %v203_v54 = vld [vmem:[#allocation4 + $0xd0] sm:$0xff] }
 0x2e3   :  { %1666 = vmatmul.mubr.msk.f32.vlgmr.msra.gmra.mxu1 %vm581_vm1, %v580_v55  ;;  %v196_v55 = vld [vmem:[#allocation4 + $0x98] sm:$0xff] }
 0x2e4   :  { %874 = vmatpush1.msra.mxu1 %v1988_v36  ;;  %921 = vmatprep.mubr.f32.mxu1 %v1902_v0 }
 0x2e5   :  { %875 = vmatprep.subr.mxu1 %v1990_v37 }
 0x2e6   :  { %876 = vmatpush1.msra.mxu1 %v1995_v38 }
 0x2e7   :  { %877 = vmatprep.subr.mxu1 %v1998_v40 }
 0x2e8   :  { %878 = vmatpush1.msra.mxu1 %v2003_v41 }
 0x2e9   :  { %879 = vmatprep.subr.mxu1 %v2006_v42 }
 0x2ea   :  { %880 = vmatpush1.msra.mxu1 %v2009_v43 }
 0x2eb   :  { %881 = vmatprep.subr.mxu1 %v2012_v44 }
 0x2ec   :  { %882 = vmatpush1.msra.mxu1 %v2015_v45 }
 0x2ed   :  { %883 = vmatprep.subr.mxu1 %v2018_v46 }
 0x2ee   :  { %884 = vmatpush1.msra.mxu1 %v2021_v47 }
 0x2ef   :  { %885 = vmatprep.subr.mxu1 %v2024_v48 }
 0x2f0   :  { %886 = vmatpush1.msra.mxu1 %v2027_v49 }
 0x2f1   :  { %887 = vmatprep.subr.mxu1 %v2030_v50 }
 0x2f2   :  { %888 = vmatpush1.msra.mxu1 %v2035_v51 }
 0x2f3   :  { %1139 = vmatprep.subr.mxu1 %v1986_v35 }
 0x3a3   :  { %v651_v62 = vpop.f32.mrf.mxu1 }
 0x3a4   :  { %v687_v1 = vadd.f32 %v651_v62, %v320_v61  ;;  %v188_v61 = vld [vmem:[#allocation4 + $0x58] sm:$0xff]  ;;  %v187_v62 = vld [vmem:[#allocation4 + $0x50] sm:$0xff] }
 0x3a5   :  { %v653_v2 = vpop.f32.mrf.mxu1 }
 0x3a6   :  { %1709 = vtanh.f32 %v687_v1  ;;  %v662_v3 = vadd.f32 %v2070_v63, %v653_v2  ;;  %v1669_v6 = vmul.f32 -1.442695, %v687_v1  ;;  %v180_v1 = vld [vmem:[#allocation4 + $0x18] sm:$0xff]  ;;  %v179_v2 = vld [vmem:[#allocation4 + $0x10] sm:$0xff] }
 0x3a8   :  { %1711 = vtanh.f32 %v662_v3  ;;  %v1668_v7 = vmul.f32 -1.442695, %v662_v3  ;;  %v208_v3 = vld [vmem:[#allocation4 + $0xf8] sm:$0xff] }
 0x3a9   :  { %1713 = vpow2.f32 %v1669_v6  ;;  %v199_v6 = vld [vmem:[#allocation4 + $0xb0] sm:$0xff] }
 0x3aa   :  { %1715 = vpow2.f32 %v1668_v7  ;;  %v192_v7 = vld [vmem:[#allocation4 + $0x78] sm:$0xff] }
 0x3b3   :  { %v1710_v4 = vpop.eup %1709 }
 0x3b4   :  { %697 = vrot.lane.b32.xlu1 %v1710_v4, %s1903_s0  ;;  %v207_v4 = vld [vmem:[#allocation4 + $0xf0] sm:$0xff] }
 0x3b5   :  { %v1712_v5 = vpop.eup %1711 }
 0x3b6   :  { %672 = vrot.lane.b32.xlu0 %v1712_v5, %s1903_s0  ;;  %v1714_v8 = vpop.eup %1713  ;;  %v200_v5 = vld [vmem:[#allocation4 + $0xb8] sm:$0xff] }
 0x3b7   :  { %v1716_v10 = vpop.eup %1715  ;;  %v691_v14 = vadd.f32 1.0, %v1714_v8  ;;  %v191_v8 = vld [vmem:[#allocation4 + $0x70] sm:$0xff] }
 0x3b8   :  { %v666_v15 = vadd.f32 1.0, %v1716_v10  ;;  %v184_v10 = vld [vmem:[#allocation4 + $0x38] sm:$0xff] }
 0x3b9   :  { %1717 = vrcp.f32 %v691_v14  ;;  %v183_v14 = vld [vmem:[#allocation4 + $0x30] sm:$0xff] }
 0x3ba   :  { %1719 = vrcp.f32 %v666_v15 }
 0x3c6   :  { %v2075_v16 = vpop.eup %1717 }
 0x3c7   :  { %v2078_v19 = vpop.eup %1719  ;;  %v695_v22 = vmul.f32 %v2075_v16, %v1983_v26  ;;  %v72_v26 = vld [vmem:[#allocation2 + $0x10] sm:$0xff] }
 0x3c8   :  { %v670_v25 = vmul.f32 0.0, %v2078_v19  ;;  %123 = vmatpush1.msra.mxu0 %v72_v26 }
 0x3c9   :  { %124 = vmatprep.subr.mxu0 %v71_v34 }
 0x3ca   :  { %125 = vmatpush1.msra.mxu0 %v70_v39 }
 0x3cb   :  { %1659 = vmatmul.mubr.msk.f32.vlgmr.msra.gmra.mxu0 %vm90_vm0, %v1965_v9  ;;  %346 = vmatprep.subr.mxu0 %v204_v52 }
 0x3cc   :  { %347 = vmatpush1.msra.mxu0 %v203_v54  ;;  %386 = vmatprep.mubr.f32.mxu0 %v1902_v0 }
 0x3cd   :  { %348 = vmatprep.subr.mxu0 %v196_v55 }
 0x3ce   :  { %349 = vmatpush1.msra.mxu0 %v195_v57 }
 0x3cf   :  { %350 = vmatprep.subr.mxu0 %v188_v61 }
 0x3d0   :  { %351 = vmatpush1.msra.mxu0 %v187_v62 }
 0x3d1   :  { %352 = vmatprep.subr.mxu0 %v180_v1 }
 0x3d2   :  { %353 = vmatpush1.msra.mxu0 %v179_v2 }
 0x3d3   :  { %1662 = vmatmul.mubr.msk.f32.vlgmr.msra.gmra.mxu0 %vm90_vm0, %v1965_v9  ;;  %488 = vmatprep.subr.mxu0 %v208_v3 }
 0x3d4   :  { %489 = vmatpush1.msra.mxu0 %v207_v4  ;;  %528 = vmatprep.mubr.f32.mxu0 %v1902_v0 }
 0x3d5   :  { %490 = vmatprep.subr.mxu0 %v200_v5 }
 0x3d6   :  { %491 = vmatpush1.msra.mxu0 %v199_v6 }
 0x3d7   :  { %492 = vmatprep.subr.mxu0 %v192_v7 }
 0x3d8   :  { %493 = vmatpush1.msra.mxu0 %v191_v8 }
 0x3d9   :  { %494 = vmatprep.subr.mxu0 %v184_v10 }
 0x3da   :  { %495 = vmatpush1.msra.mxu0 %v183_v14 }
 0x3db   :  { %1664 = vmatmul.mubr.msk.f32.vlgmr.msra.gmra.mxu0 %vm90_vm0, %v1965_v9  ;;  %740 = vmatprep.subr.mxu0 %v1986_v35 }
 0x3dc   :  { %741 = vmatpush1.msra.mxu0 %v1988_v36  ;;  %788 = vmatprep.mubr.f32.mxu0 %v1902_v0 }
 0x3dd   :  { %742 = vmatprep.subr.mxu0 %v1990_v37 }
 0x3de   :  { %743 = vmatpush1.msra.mxu0 %v1995_v38 }
 0x3df   :  { %744 = vmatprep.subr.mxu0 %v1998_v40 }
 0x3e0   :  { %745 = vmatpush1.msra.mxu0 %v2003_v41 }
 0x3e1   :  { %746 = vmatprep.subr.mxu0 %v2006_v42 }
 0x3e2   :  { %747 = vmatpush1.msra.mxu0 %v2009_v43 }
 0x3e3   :  { %748 = vmatprep.subr.mxu0 %v2012_v44 }
 0x3e4   :  { %749 = vmatpush1.msra.mxu0 %v2015_v45 }
 0x3e5   :  { %750 = vmatprep.subr.mxu0 %v2018_v46 }
 0x3e6   :  { %751 = vmatpush1.msra.mxu0 %v2021_v47 }
 0x3e7   :  { %752 = vmatprep.subr.mxu0 %v2024_v48 }
 0x3e8   :  { %753 = vmatpush1.msra.mxu0 %v2027_v49 }
 0x3e9   :  { %754 = vmatprep.subr.mxu0 %v2030_v50 }
 0x3ea   :  { %755 = vmatpush1.msra.mxu0 %v2035_v51 }
 0x3eb   :  { %1006 = vmatprep.subr.mxu0 %v1986_v35 }
 0x426   :  { %v698_v17 = vpop.permute.xlu1 %697 }
 0x427   :  { %v700_v18 = vmul.f32 %v2075_v16, %v698_v17 }
 0x428   :  { %v673_v20 = vpop.permute.xlu0 %672 }
 0x429   :  { %702 = vrot.lane.b32.xlu1 %v700_v18, %s1903_s0  ;;  %v675_v21 = vmul.f32 %v2078_v19, %v673_v20  ;;  %v78_v20 = vld [vmem:[%s2386_s2] sm:$0x3] }
 0x42b   :  { %677 = vrot.lane.b32.xlu0 %v675_v21, %s1903_s0  ;;  %v83_v21 = vrot.slane %v78_v20, %v82_v12 }
 0x49b   :  { %v703_v23 = vpop.permute.xlu1 %702 }
 0x49c   :  { %v2085_v24 = vadd.f32 %v703_v23, %v695_v22  ;;  %v160_v22 = vpop.f32.mrf.mxu0 }
 0x49d   :  { %v678_v27 = vpop.permute.xlu0 %677  ;;  %v161_v23 = vadd.f32 %v160_v22, %v83_v21 }
 0x49e   :  { %1721 = vtanh.f32 %v2085_v24  ;;  %v2089_v28 = vadd.f32 %v678_v27, %v670_v25  ;;  %v162_v25 = vpop.f32.mrf.mxu0 }
 0x4a0   :  { %1723 = vtanh.f32 %v2089_v28  ;;  %v388_v12 = vpop.f32.mrf.mxu0 }
 0x4a2   :  { %v2157_v32 = vpop.f32.mrf.mxu0 }
 0x4a4   :  { %v2159_v33 = vpop.f32.mrf.mxu0 }
 0x4a6   :  { %v2162_v34 = vpop.f32.mrf.mxu0 }
 0x4ab   :  { %v1722_v53 = vpop.eup %1721 }
 0x4ac   :  { %708 = vrot.lane.b32.xlu1 %v1722_v53, %s1903_s0 }
 0x4ad   :  { %v1724_v59 = vpop.eup %1723 }
 0x4ae   :  { %683 = vrot.lane.b32.xlu0 %v1724_v59, %s1903_s0 }
 0x51e   :  { %v709_v9 = vpop.permute.xlu1 %708 }
 0x51f   :  { %v711_v15 = vmul.f32 %v2075_v16, %v709_v9  ;;  %v87_v16 = vrot.slane %v78_v20, %v86_v56  ;;  %v221_v56 = vsub.s32 2, %v1970_v11 }
 0x520   :  { %v684_v17 = vpop.permute.xlu0 %683 }
 0x521   :  { %713 = vrot.lane.b32.xlu0 %v711_v15, %s1897_s9  ;;  %v2123_v18 = vmul.f32 %v2078_v19, %v684_v17  ;;  %v163_v27 = vadd.f32 %v162_v25, %v87_v16  ;;  %v222_v26 = vrot.slane %v1976_v13, %v221_v56 }
 0x523   :  { %717 = vrot.lane.b32.xlu1 %v2123_v18, %s1904_s27  ;;  %v167_v19 = vcombine.low %v161_v23, %v163_v27  ;;  %v389_v39 = vadd.f32 %v388_v12, %v222_v26 }
 0x525   :  { %1660 = vst.sshfl [vmem:[%s2391_s7] sm:$0x33 pattern:$0x76325410] %v167_v19 }
 0x593   :  { %v714_v29 = vpop.permute.xlu0 %713 }
 0x595   :  { %v718_v30 = vpop.permute.xlu1 %717 }
 0x596   :  { %v720_v31 = vsel %vm90_vm0, %v714_v29, %v718_v30 }
 0x597   :  { %1670 = vmatmul.mubr.msk.f32.vlgmr.msra.gmra.mxu0 %vm581_vm1, %v720_v31  ;;  %v225_v31 = vsub.s32 3, %v1970_v11 }
 0x598   :  { %1007 = vmatpush1.msra.mxu0 %v1988_v36  ;;  %1054 = vmatprep.mubr.f32.mxu0 %v1902_v0 }
 0x599   :  { %1008 = vmatprep.subr.mxu0 %v1990_v37  ;;  %v226_v12 = vrot.slane %v1976_v13, %v225_v31 }
 0x59a   :  { %1009 = vmatpush1.msra.mxu0 %v1995_v38 }
 0x59b   :  { %1010 = vmatprep.subr.mxu0 %v1998_v40  ;;  %v391_v56 = vadd.f32 %v2157_v32, %v226_v12 }
 0x59c   :  { %1011 = vmatpush1.msra.mxu0 %v2003_v41 }
 0x59d   :  { %1012 = vmatprep.subr.mxu0 %v2006_v42 }
 0x59e   :  { %1013 = vmatpush1.msra.mxu0 %v2009_v43 }
 0x59f   :  { %1014 = vmatprep.subr.mxu0 %v2012_v44 }
 0x5a0   :  { %1015 = vmatpush1.msra.mxu0 %v2015_v45 }
 0x5a1   :  { %1016 = vmatprep.subr.mxu0 %v2018_v46 }
 0x5a2   :  { %1017 = vmatpush1.msra.mxu0 %v2021_v47 }
 0x5a3   :  { %1018 = vmatprep.subr.mxu0 %v2024_v48 }
 0x5a4   :  { %1019 = vmatpush1.msra.mxu0 %v2027_v49 }
 0x5a5   :  { %1020 = vmatprep.subr.mxu0 %v2030_v50 }
 0x5a6   :  { %1021 = vmatpush1.msra.mxu0 %v2035_v51 }
 0x5a7   :  { %1272 = vmatprep.subr.mxu0 %v1986_v35 }
 0x657   :  { %v790_v52 = vpop.f32.mrf.mxu0 }
 0x658   :  { %v820_v53 = vadd.f32 %v790_v52, %v389_v39 }
 0x659   :  { %v792_v54 = vpop.f32.mrf.mxu0 }
 0x65a   :  { %1725 = vtanh.f32 %v820_v53  ;;  %v795_v55 = vadd.f32 %v2070_v63, %v792_v54  ;;  %v1672_v61 = vmul.f32 -1.442695, %v820_v53 }
 0x65c   :  { %1727 = vtanh.f32 %v795_v55  ;;  %v1671_v62 = vmul.f32 -1.442695, %v795_v55 }
 0x65d   :  { %1729 = vpow2.f32 %v1672_v61 }
 0x65e   :  { %1731 = vpow2.f32 %v1671_v62 }
 0x667   :  { %v1726_v57 = vpop.eup %1725 }
 0x668   :  { %830 = vrot.lane.b32.xlu1 %v1726_v57, %s1903_s0 }
 0x669   :  { %v1728_v59 = vpop.eup %1727 }
 0x66a   :  { %805 = vrot.lane.b32.xlu0 %v1728_v59, %s1903_s0  ;;  %v1730_v1 = vpop.eup %1729 }
 0x66b   :  { %v1732_v2 = vpop.eup %1731  ;;  %v824_v3 = vadd.f32 1.0, %v1730_v1 }
 0x66c   :  { %v799_v4 = vadd.f32 1.0, %v1732_v2 }
 0x66d   :  { %1733 = vrcp.f32 %v824_v3 }
 0x66e   :  { %1735 = vrcp.f32 %v799_v4 }
 0x67a   :  { %v1734_v5 = vpop.eup %1733 }
 0x67b   :  { %v1736_v8 = vpop.eup %1735  ;;  %v828_v9 = vmul.f32 %v1734_v5, %v2085_v24 }
 0x67c   :  { %v803_v20 = vmul.f32 %v1736_v8, %v2089_v28 }
 0x6da   :  { %v831_v6 = vpop.permute.xlu1 %830 }
 0x6db   :  { %v833_v7 = vmul.f32 %v1734_v5, %v831_v6 }
 0x6dc   :  { %v806_v10 = vpop.permute.xlu0 %805 }
 0x6dd   :  { %835 = vrot.lane.b32.xlu1 %v833_v7, %s1903_s0  ;;  %v808_v14 = vmul.f32 %v1736_v8, %v806_v10 }
 0x6df   :  { %810 = vrot.lane.b32.xlu0 %v808_v14, %s1903_s0 }
 0x74f   :  { %v836_v15 = vpop.permute.xlu1 %835 }
 0x750   :  { %v2170_v17 = vadd.f32 %v836_v15, %v828_v9 }
 0x751   :  { %v811_v21 = vpop.permute.xlu0 %810 }
 0x752   :  { %1737 = vtanh.f32 %v2170_v17  ;;  %v2174_v16 = vadd.f32 %v811_v21, %v803_v20 }
 0x754   :  { %1739 = vtanh.f32 %v2174_v16 }
 0x75f   :  { %v1738_v22 = vpop.eup %1737 }
 0x760   :  { %841 = vrot.lane.b32.xlu1 %v1738_v22, %s1903_s0 }
 0x761   :  { %v1740_v23 = vpop.eup %1739 }
 0x762   :  { %816 = vrot.lane.b32.xlu0 %v1740_v23, %s1903_s0 }
 0x7d2   :  { %v842_v25 = vpop.permute.xlu1 %841 }
 0x7d3   :  { %v844_v24 = vmul.f32 %v1734_v5, %v842_v25 }
 0x7d4   :  { %v817_v27 = vpop.permute.xlu0 %816 }
 0x7d5   :  { %846 = vrot.lane.b32.xlu0 %v844_v24, %s1897_s9  ;;  %v819_v19 = vmul.f32 %v1736_v8, %v817_v27 }
 0x7d7   :  { %850 = vrot.lane.b32.xlu1 %v819_v19, %s1904_s27 }
 0x847   :  { %v847_v28 = vpop.permute.xlu0 %846 }
 0x849   :  { %v2181_v29 = vpop.permute.xlu1 %850 }
 0x84a   :  { %v853_v30 = vsel %vm90_vm0, %v847_v28, %v2181_v29  ;;  %v229_v28 = vsub.s32 4, %v1970_v11 }
 0x84b   :  { %1673 = vmatmul.mubr.msk.f32.vlgmr.msra.gmra.mxu1 %vm581_vm1, %v853_v30 }
 0x84c   :  { %1140 = vmatpush1.msra.mxu1 %v1988_v36  ;;  %1187 = vmatprep.mubr.f32.mxu1 %v1902_v0  ;;  %v230_v30 = vrot.slane %v1976_v13, %v229_v28 }
 0x84d   :  { %1141 = vmatprep.subr.mxu1 %v1990_v37 }
 0x84e   :  { %1142 = vmatpush1.msra.mxu1 %v1995_v38  ;;  %v460_v31 = vadd.f32 %v2060_v58, %v230_v30 }
 0x84f   :  { %1143 = vmatprep.subr.mxu1 %v1998_v40 }
 0x850   :  { %1144 = vmatpush1.msra.mxu1 %v2003_v41 }
 0x851   :  { %1145 = vmatprep.subr.mxu1 %v2006_v42 }
 0x852   :  { %1146 = vmatpush1.msra.mxu1 %v2009_v43 }
 0x853   :  { %1147 = vmatprep.subr.mxu1 %v2012_v44 }
 0x854   :  { %1148 = vmatpush1.msra.mxu1 %v2015_v45 }
 0x855   :  { %1149 = vmatprep.subr.mxu1 %v2018_v46 }
 0x856   :  { %1150 = vmatpush1.msra.mxu1 %v2021_v47 }
 0x857   :  { %1151 = vmatprep.subr.mxu1 %v2024_v48 }
 0x858   :  { %1152 = vmatpush1.msra.mxu1 %v2027_v49 }
 0x859   :  { %1153 = vmatprep.subr.mxu1 %v2030_v50 }
 0x85a   :  { %1154 = vmatpush1.msra.mxu1 %v2035_v51 }
 0x85b   :  { %1405 = vmatprep.subr.mxu1 %v1986_v35 }
 0x90b   :  { %v923_v26 = vpop.f32.mrf.mxu1 }
 0x90c   :  { %v953_v39 = vadd.f32 %v923_v26, %v391_v56 }
 0x90d   :  { %v925_v52 = vpop.f32.mrf.mxu1 }
 0x90e   :  { %1741 = vtanh.f32 %v953_v39  ;;  %v928_v53 = vadd.f32 %v2070_v63, %v925_v52  ;;  %v1675_v57 = vmul.f32 -1.442695, %v953_v39 }
 0x910   :  { %1743 = vtanh.f32 %v928_v53  ;;  %v1674_v59 = vmul.f32 -1.442695, %v928_v53 }
 0x911   :  { %1745 = vpow2.f32 %v1675_v57 }
 0x912   :  { %1747 = vpow2.f32 %v1674_v59 }
 0x91b   :  { %v1742_v54 = vpop.eup %1741 }
 0x91c   :  { %963 = vrot.lane.b32.xlu1 %v1742_v54, %s1903_s0 }
 0x91d   :  { %v1744_v55 = vpop.eup %1743 }
 0x91e   :  { %938 = vrot.lane.b32.xlu0 %v1744_v55, %s1903_s0  ;;  %v1746_v61 = vpop.eup %1745 }
 0x91f   :  { %v1748_v62 = vpop.eup %1747  ;;  %v957_v32 = vadd.f32 1.0, %v1746_v61 }
 0x920   :  { %v932_v1 = vadd.f32 1.0, %v1748_v62 }
 0x921   :  { %1749 = vrcp.f32 %v957_v32 }
 0x922   :  { %1751 = vrcp.f32 %v932_v1 }
 0x92e   :  { %v1750_v2 = vpop.eup %1749 }
 0x92f   :  { %v1752_v5 = vpop.eup %1751  ;;  %v961_v8 = vmul.f32 %v1750_v2, %v2170_v17 }
 0x930   :  { %v936_v9 = vmul.f32 %v1752_v5, %v2174_v16 }
 0x98e   :  { %v964_v3 = vpop.permute.xlu1 %963 }
 0x98f   :  { %v966_v4 = vmul.f32 %v1750_v2, %v964_v3 }
 0x990   :  { %v939_v6 = vpop.permute.xlu0 %938 }
 0x991   :  { %968 = vrot.lane.b32.xlu1 %v966_v4, %s1903_s0  ;;  %v941_v7 = vmul.f32 %v1752_v5, %v939_v6 }
 0x993   :  { %943 = vrot.lane.b32.xlu0 %v941_v7, %s1903_s0 }
 0xa03   :  { %v969_v10 = vpop.permute.xlu1 %968 }
 0xa04   :  { %v2212_v14 = vadd.f32 %v969_v10, %v961_v8 }
 0xa05   :  { %v944_v15 = vpop.permute.xlu0 %943 }
 0xa06   :  { %1753 = vtanh.f32 %v2212_v14  ;;  %v2216_v20 = vadd.f32 %v944_v15, %v936_v9 }
 0xa08   :  { %1755 = vtanh.f32 %v2216_v20 }
 0xa13   :  { %v1754_v21 = vpop.eup %1753 }
 0xa14   :  { %974 = vrot.lane.b32.xlu1 %v1754_v21, %s1903_s0 }
 0xa15   :  { %v1756_v22 = vpop.eup %1755 }
 0xa16   :  { %949 = vrot.lane.b32.xlu0 %v1756_v22, %s1903_s0 }
 0xa86   :  { %v975_v23 = vpop.permute.xlu1 %974 }
 0xa87   :  { %v977_v17 = vmul.f32 %v1750_v2, %v975_v23 }
 0xa88   :  { %v950_v25 = vpop.permute.xlu0 %949 }
 0xa89   :  { %979 = vrot.lane.b32.xlu0 %v977_v17, %s1897_s9  ;;  %v2222_v24 = vmul.f32 %v1752_v5, %v950_v25 }
 0xa8b   :  { %983 = vrot.lane.b32.xlu1 %v2222_v24, %s1904_s27 }
 0xafb   :  { %v980_v16 = vpop.permute.xlu0 %979 }
 0xafd   :  { %v984_v27 = vpop.permute.xlu1 %983 }
 0xafe   :  { %v986_v19 = vsel %vm90_vm0, %v980_v16, %v984_v27  ;;  %v233_v16 = vsub.s32 5, %v1970_v11 }
 0xaff   :  { %1676 = vmatmul.mubr.msk.f32.vlgmr.msra.gmra.mxu0 %vm581_vm1, %v986_v19 }
 0xb00   :  { %1273 = vmatpush1.msra.mxu0 %v1988_v36  ;;  %1320 = vmatprep.mubr.f32.mxu0 %v1902_v0  ;;  %v234_v27 = vrot.slane %v1976_v13, %v233_v16 }
 0xb01   :  { %1274 = vmatprep.subr.mxu0 %v1990_v37 }
 0xb02   :  { %1275 = vmatpush1.msra.mxu0 %v1995_v38  ;;  %v462_v19 = vadd.f32 %v2065_v60, %v234_v27 }
 0xb03   :  { %1276 = vmatprep.subr.mxu0 %v1998_v40 }
 0xb04   :  { %1277 = vmatpush1.msra.mxu0 %v2003_v41 }
 0xb05   :  { %1278 = vmatprep.subr.mxu0 %v2006_v42 }
 0xb06   :  { %1279 = vmatpush1.msra.mxu0 %v2009_v43 }
 0xb07   :  { %1280 = vmatprep.subr.mxu0 %v2012_v44 }
 0xb08   :  { %1281 = vmatpush1.msra.mxu0 %v2015_v45 }
 0xb09   :  { %1282 = vmatprep.subr.mxu0 %v2018_v46 }
 0xb0a   :  { %1283 = vmatpush1.msra.mxu0 %v2021_v47 }
 0xb0b   :  { %1284 = vmatprep.subr.mxu0 %v2024_v48 }
 0xb0c   :  { %1285 = vmatpush1.msra.mxu0 %v2027_v49 }
 0xb0d   :  { %1286 = vmatprep.subr.mxu0 %v2030_v50 }
 0xb0e   :  { %1287 = vmatpush1.msra.mxu0 %v2035_v51 }
 0xb0f   :  { %1538 = vmatprep.subr.mxu0 %v1986_v35 }
 0xbbf   :  { %v1056_v12 = vpop.f32.mrf.mxu0 }
 0xbc0   :  { %v1086_v56 = vadd.f32 %v1056_v12, %v460_v31 }
 0xbc1   :  { %v1058_v26 = vpop.f32.mrf.mxu0 }
 0xbc2   :  { %1757 = vtanh.f32 %v1086_v56  ;;  %v1061_v39 = vadd.f32 %v2070_v63, %v1058_v26  ;;  %v1678_v35 = vmul.f32 -1.442695, %v1086_v56 }
 0xbc4   :  { %1759 = vtanh.f32 %v1061_v39  ;;  %v1677_v54 = vmul.f32 -1.442695, %v1061_v39 }
 0xbc5   :  { %1761 = vpow2.f32 %v1678_v35 }
 0xbc6   :  { %1763 = vpow2.f32 %v1677_v54 }
 0xbcf   :  { %v1758_v52 = vpop.eup %1757 }
 0xbd0   :  { %1096 = vrot.lane.b32.xlu1 %v1758_v52, %s1903_s0 }
 0xbd1   :  { %v1760_v53 = vpop.eup %1759 }
 0xbd2   :  { %1071 = vrot.lane.b32.xlu0 %v1760_v53, %s1903_s0  ;;  %v1762_v55 = vpop.eup %1761 }
 0xbd3   :  { %v1764_v57 = vpop.eup %1763  ;;  %v1090_v58 = vadd.f32 1.0, %v1762_v55 }
 0xbd4   :  { %v1065_v59 = vadd.f32 1.0, %v1764_v57 }
 0xbd5   :  { %1765 = vrcp.f32 %v1090_v58 }
 0xbd6   :  { %1767 = vrcp.f32 %v1065_v59 }
 0xbe2   :  { %v1766_v61 = vpop.eup %1765 }
 0xbe3   :  { %v1768_v1 = vpop.eup %1767  ;;  %v1094_v4 = vmul.f32 %v1766_v61, %v2212_v14 }
 0xbe4   :  { %v1069_v7 = vmul.f32 %v1768_v1, %v2216_v20 }
 0xc42   :  { %v1097_v62 = vpop.permute.xlu1 %1096 }
 0xc43   :  { %v1099_v32 = vmul.f32 %v1766_v61, %v1097_v62 }
 0xc44   :  { %v1072_v2 = vpop.permute.xlu0 %1071 }
 0xc45   :  { %1101 = vrot.lane.b32.xlu1 %v1099_v32, %s1903_s0  ;;  %v1074_v3 = vmul.f32 %v1768_v1, %v1072_v2 }
 0xc47   :  { %1076 = vrot.lane.b32.xlu0 %v1074_v3, %s1903_s0 }
 0xcb7   :  { %v1102_v5 = vpop.permute.xlu1 %1101 }
 0xcb8   :  { %v2254_v6 = vadd.f32 %v1102_v5, %v1094_v4 }
 0xcb9   :  { %v1077_v8 = vpop.permute.xlu0 %1076 }
 0xcba   :  { %1769 = vtanh.f32 %v2254_v6  ;;  %v2258_v10 = vadd.f32 %v1077_v8, %v1069_v7 }
 0xcbc   :  { %1771 = vtanh.f32 %v2258_v10 }
 0xcc7   :  { %v1770_v9 = vpop.eup %1769 }
 0xcc8   :  { %1107 = vrot.lane.b32.xlu1 %v1770_v9, %s1903_s0 }
 0xcc9   :  { %v1772_v15 = vpop.eup %1771 }
 0xcca   :  { %1082 = vrot.lane.b32.xlu0 %v1772_v15, %s1903_s0 }
 0xd3a   :  { %v1108_v21 = vpop.permute.xlu1 %1107 }
 0xd3b   :  { %v1110_v14 = vmul.f32 %v1766_v61, %v1108_v21 }
 0xd3c   :  { %v1083_v22 = vpop.permute.xlu0 %1082 }
 0xd3d   :  { %1112 = vrot.lane.b32.xlu0 %v1110_v14, %s1897_s9  ;;  %v2264_v23 = vmul.f32 %v1768_v1, %v1083_v22 }
 0xd3f   :  { %1116 = vrot.lane.b32.xlu1 %v2264_v23, %s1904_s27 }
 0xdaf   :  { %v1113_v20 = vpop.permute.xlu0 %1112 }
 0xdb1   :  { %v1117_v17 = vpop.permute.xlu1 %1116 }
 0xdb2   :  { %v1119_v25 = vsel %vm90_vm0, %v1113_v20, %v1117_v17 }
 0xdb3   :  { %1679 = vmatmul.mubr.msk.f32.vlgmr.msra.gmra.mxu1 %vm581_vm1, %v1119_v25 }
 0xdb4   :  { %1406 = vmatpush1.msra.mxu1 %v1988_v36  ;;  %1453 = vmatprep.mubr.f32.mxu1 %v1902_v0 }
 0xdb5   :  { %1407 = vmatprep.subr.mxu1 %v1990_v37 }
 0xdb6   :  { %1408 = vmatpush1.msra.mxu1 %v1995_v38 }
 0xdb7   :  { %1409 = vmatprep.subr.mxu1 %v1998_v40 }
 0xdb8   :  { %1410 = vmatpush1.msra.mxu1 %v2003_v41 }
 0xdb9   :  { %1411 = vmatprep.subr.mxu1 %v2006_v42 }
 0xdba   :  { %1412 = vmatpush1.msra.mxu1 %v2009_v43 }
 0xdbb   :  { %1413 = vmatprep.subr.mxu1 %v2012_v44 }
 0xdbc   :  { %1414 = vmatpush1.msra.mxu1 %v2015_v45 }
 0xdbd   :  { %1415 = vmatprep.subr.mxu1 %v2018_v46 }
 0xdbe   :  { %1416 = vmatpush1.msra.mxu1 %v2021_v47 }
 0xdbf   :  { %1417 = vmatprep.subr.mxu1 %v2024_v48 }
 0xdc0   :  { %1418 = vmatpush1.msra.mxu1 %v2027_v49 }
 0xdc1   :  { %1419 = vmatprep.subr.mxu1 %v2030_v50 }
 0xdc2   :  { %1420 = vmatpush1.msra.mxu1 %v2035_v51 }
 0xe73   :  { %v1189_v28 = vpop.f32.mrf.mxu1 }
 0xe74   :  { %v1219_v30 = vadd.f32 %v1189_v28, %v462_v19 }
 0xe75   :  { %v1191_v31 = vpop.f32.mrf.mxu1 }
 0xe76   :  { %1773 = vtanh.f32 %v1219_v30  ;;  %v1194_v12 = vadd.f32 %v2070_v63, %v1191_v31  ;;  %v1681_v39 = vmul.f32 -1.442695, %v1219_v30 }
 0xe78   :  { %1775 = vtanh.f32 %v1194_v12  ;;  %v1680_v52 = vmul.f32 -1.442695, %v1194_v12 }
 0xe79   :  { %1777 = vpow2.f32 %v1681_v39 }
 0xe7a   :  { %1779 = vpow2.f32 %v1680_v52 }
 0xe83   :  { %v1774_v56 = vpop.eup %1773 }
 0xe84   :  { %1229 = vrot.lane.b32.xlu1 %v1774_v56, %s1903_s0 }
 0xe85   :  { %v1776_v26 = vpop.eup %1775 }
 0xe86   :  { %1204 = vrot.lane.b32.xlu0 %v1776_v26, %s1903_s0  ;;  %v1778_v13 = vpop.eup %1777 }
 0xe87   :  { %v1780_v53 = vpop.eup %1779  ;;  %v1223_v60 = vadd.f32 1.0, %v1778_v13 }
 0xe88   :  { %v1198_v35 = vadd.f32 1.0, %v1780_v53 }
 0xe89   :  { %1781 = vrcp.f32 %v1223_v60 }
 0xe8a   :  { %1783 = vrcp.f32 %v1198_v35 }
 0xe96   :  { %v1782_v54 = vpop.eup %1781 }
 0xe97   :  { %v1784_v58 = vpop.eup %1783  ;;  %v1227_v62 = vmul.f32 %v1782_v54, %v2254_v6 }
 0xe98   :  { %v1202_v2 = vmul.f32 %v1784_v58, %v2258_v10 }
 0xef6   :  { %v1230_v55 = vpop.permute.xlu1 %1229 }
 0xef7   :  { %v1232_v57 = vmul.f32 %v1782_v54, %v1230_v55  ;;  %v241_v55 = vsub.s32 7, %v1970_v11 }
 0xef8   :  { %v1205_v59 = vpop.permute.xlu0 %1204 }
 0xef9   :  { %1234 = vrot.lane.b32.xlu1 %v1232_v57, %s1903_s0  ;;  %v1207_v61 = vmul.f32 %v1784_v58, %v1205_v59 }
 0xefb   :  { %1209 = vrot.lane.b32.xlu0 %v1207_v61, %s1903_s0 }
 0xf6b   :  { %v1235_v32 = vpop.permute.xlu1 %1234 }
 0xf6c   :  { %v2295_v1 = vadd.f32 %v1235_v32, %v1227_v62 }
 0xf6d   :  { %v1210_v3 = vpop.permute.xlu0 %1209 }
 0xf6e   :  { %1785 = vtanh.f32 %v2295_v1  ;;  %v2299_v4 = vadd.f32 %v1210_v3, %v1202_v2 }
 0xf70   :  { %1787 = vtanh.f32 %v2299_v4 }
 0xf7b   :  { %v1786_v5 = vpop.eup %1785 }
 0xf7c   :  { %1240 = vrot.lane.b32.xlu1 %v1786_v5, %s1903_s0 }
 0xf7d   :  { %v1788_v7 = vpop.eup %1787 }
 0xf7e   :  { %1215 = vrot.lane.b32.xlu0 %v1788_v7, %s1903_s0 }
 0xfee   :  { %v1241_v8 = vpop.permute.xlu1 %1240 }
 0xfef   :  { %v1243_v6 = vmul.f32 %v1782_v54, %v1241_v8 }
 0xff0   :  { %v1216_v9 = vpop.permute.xlu0 %1215 }
 0xff1   :  { %1245 = vrot.lane.b32.xlu0 %v1243_v6, %s1897_s9  ;;  %v2305_v15 = vmul.f32 %v1784_v58, %v1216_v9 }
 0xff3   :  { %1249 = vrot.lane.b32.xlu1 %v2305_v15, %s1904_s27 }
0x1063   :  { %v1246_v10 = vpop.permute.xlu0 %1245 }
0x1065   :  { %v1250_v21 = vpop.permute.xlu1 %1249 }
0x1066   :  { %v1252_v14 = vsel %vm90_vm0, %v1246_v10, %v1250_v21 }
0x1067   :  { %1682 = vmatmul.mubr.msk.f32.vlgmr.msra.gmra.mxu0 %vm581_vm1, %v1252_v14 }
0x1068   :  { %1539 = vmatpush1.msra.mxu0 %v1988_v36  ;;  %1586 = vmatprep.mubr.f32.mxu0 %v1902_v0  ;;  %v237_v0 = vsub.s32 6, %v1970_v11  ;;  %v1829_v36 = vld [vmem:[%s2388_s4] sm:$0xff] }
0x1069   :  { %1540 = vmatprep.subr.mxu0 %v1990_v37  ;;  %v242_v57 = vrot.slane %v1829_v36, %v241_v55 }
0x106a   :  { %1541 = vmatpush1.msra.mxu0 %v1995_v38  ;;  %v238_v37 = vrot.slane %v1829_v36, %v237_v0 }
0x106b   :  { %1542 = vmatprep.subr.mxu0 %v1998_v40  ;;  %v533_v58 = vadd.f32 %v2162_v34, %v242_v57 }
0x106c   :  { %1543 = vmatpush1.msra.mxu0 %v2003_v41  ;;  %v531_v38 = vadd.f32 %v2159_v33, %v238_v37 }
0x106d   :  { %1544 = vmatprep.subr.mxu0 %v2006_v42 }
0x106e   :  { %1545 = vmatpush1.msra.mxu0 %v2009_v43 }
0x106f   :  { %1546 = vmatprep.subr.mxu0 %v2012_v44 }
0x1070   :  { %1547 = vmatpush1.msra.mxu0 %v2015_v45 }
0x1071   :  { %1548 = vmatprep.subr.mxu0 %v2018_v46 }
0x1072   :  { %1549 = vmatpush1.msra.mxu0 %v2021_v47 }
0x1073   :  { %1550 = vmatprep.subr.mxu0 %v2024_v48 }
0x1074   :  { %1551 = vmatpush1.msra.mxu0 %v2027_v49 }
0x1075   :  { %1552 = vmatprep.subr.mxu0 %v2030_v50 }
0x1076   :  { %1553 = vmatpush1.msra.mxu0 %v2035_v51 }
0x1127   :  { %v1322_v40 = vpop.f32.mrf.mxu0 }
0x1128   :  { %v1352_v41 = vadd.f32 %v1322_v40, %v531_v38 }
0x1129   :  { %v1324_v42 = vpop.f32.mrf.mxu0 }
0x112a   :  { %1789 = vtanh.f32 %v1352_v41  ;;  %v1327_v43 = vadd.f32 %v2070_v63, %v1324_v42  ;;  %v1684_v46 = vmul.f32 -1.442695, %v1352_v41 }
0x112c   :  { %1791 = vtanh.f32 %v1327_v43  ;;  %v1683_v47 = vmul.f32 -1.442695, %v1327_v43 }
0x112d   :  { %1793 = vpow2.f32 %v1684_v46 }
0x112e   :  { %1795 = vpow2.f32 %v1683_v47 }
0x1137   :  { %v1790_v44 = vpop.eup %1789 }
0x1138   :  { %1362 = vrot.lane.b32.xlu1 %v1790_v44, %s1903_s0 }
0x1139   :  { %v1792_v45 = vpop.eup %1791 }
0x113a   :  { %1337 = vrot.lane.b32.xlu0 %v1792_v45, %s1903_s0  ;;  %v1794_v48 = vpop.eup %1793 }
0x113b   :  { %v1796_v49 = vpop.eup %1795  ;;  %v1356_v50 = vadd.f32 1.0, %v1794_v48 }
0x113c   :  { %v1331_v51 = vadd.f32 1.0, %v1796_v49 }
0x113d   :  { %1797 = vrcp.f32 %v1356_v50 }
0x113e   :  { %1799 = vrcp.f32 %v1331_v51 }
0x114a   :  { %v1798_v33 = vpop.eup %1797 }
0x114b   :  { %v1800_v17 = vpop.eup %1799  ;;  %v1360_v27 = vmul.f32 %v1798_v33, %v2295_v1 }
0x114c   :  { %v1335_v30 = vmul.f32 %v1800_v17, %v2299_v4 }
0x11aa   :  { %v1363_v22 = vpop.permute.xlu1 %1362 }
0x11ab   :  { %v1365_v20 = vmul.f32 %v1798_v33, %v1363_v22 }
0x11ac   :  { %v1338_v25 = vpop.permute.xlu0 %1337 }
0x11ad   :  { %1367 = vrot.lane.b32.xlu1 %v1365_v20, %s1903_s0  ;;  %v1340_v16 = vmul.f32 %v1800_v17, %v1338_v25 }
0x11af   :  { %1342 = vrot.lane.b32.xlu0 %v1340_v16, %s1903_s0 }
0x121f   :  { %v1368_v19 = vpop.permute.xlu1 %1367 }
0x1220   :  { %v1370_v28 = vadd.f32 %v1368_v19, %v1360_v27 }
0x1221   :  { %v1343_v31 = vpop.permute.xlu0 %1342 }
0x1222   :  { %1801 = vtanh.f32 %v1370_v28  ;;  %v1345_v12 = vadd.f32 %v1343_v31, %v1335_v30 }
0x1224   :  { %1803 = vtanh.f32 %v1345_v12 }
0x122f   :  { %v1802_v56 = vpop.eup %1801 }
0x1230   :  { %1373 = vrot.lane.b32.xlu1 %v1802_v56, %s1903_s0 }
0x1231   :  { %v1804_v26 = vpop.eup %1803 }
0x1232   :  { %1348 = vrot.lane.b32.xlu0 %v1804_v26, %s1903_s0 }
0x12a2   :  { %v1374_v39 = vpop.permute.xlu1 %1373 }
0x12a3   :  { %v1376_v52 = vmul.f32 %v1798_v33, %v1374_v39  ;;  %v1830_v33 = vld [vmem:[%s2390_s6] ss:$0 sm:$0xff] }
0x12a4   :  { %v1349_v13 = vpop.permute.xlu0 %1348 }
0x12a5   :  { %1378 = vrot.lane.b32.xlu0 %v1376_v52, %s1897_s9  ;;  %v1351_v53 = vmul.f32 %v1800_v17, %v1349_v13 }
0x12a7   :  { %1382 = vrot.lane.b32.xlu1 %v1351_v53, %s1904_s27 }
0x1317   :  { %v1379_v60 = vpop.permute.xlu0 %1378 }
0x1319   :  { %v2343_v35 = vpop.permute.xlu1 %1382 }
0x131a   :  { %v1385_v54 = vsel %vm90_vm0, %v1379_v60, %v2343_v35 }
0x131b   :  { %1685 = vmatmul.mubr.msk.f32.vlgmr.msra.gmra.mxu1 %vm581_vm1, %v1385_v54 }
0x13db   :  { %v1455_v59 = vpop.f32.mrf.mxu1 }
0x13dc   :  { %v1485_v61 = vadd.f32 %v1455_v59, %v533_v58 }
0x13dd   :  { %v1457_v62 = vpop.f32.mrf.mxu1 }
0x13de   :  { %1805 = vtanh.f32 %v1485_v61  ;;  %v1460_v32 = vadd.f32 %v2070_v63, %v1457_v62  ;;  %v1687_v3 = vmul.f32 -1.442695, %v1485_v61 }
0x13e0   :  { %1807 = vtanh.f32 %v1460_v32  ;;  %v1686_v4 = vmul.f32 -1.442695, %v1460_v32 }
0x13e1   :  { %1809 = vpow2.f32 %v1687_v3 }
0x13e2   :  { %1811 = vpow2.f32 %v1686_v4 }
0x13eb   :  { %v1806_v1 = vpop.eup %1805 }
0x13ec   :  { %1495 = vrot.lane.b32.xlu1 %v1806_v1, %s1903_s0 }
0x13ed   :  { %v1808_v2 = vpop.eup %1807 }
0x13ee   :  { %1470 = vrot.lane.b32.xlu0 %v1808_v2, %s1903_s0  ;;  %v1810_v11 = vpop.eup %1809 }
0x13ef   :  { %v1812_v5 = vpop.eup %1811  ;;  %v1489_v34 = vadd.f32 1.0, %v1810_v11 }
0x13f0   :  { %v1464_v7 = vadd.f32 1.0, %v1812_v5 }
0x13f1   :  { %1813 = vrcp.f32 %v1489_v34 }
0x13f2   :  { %1815 = vrcp.f32 %v1464_v7 }
0x13fe   :  { %v1814_v8 = vpop.eup %1813 }
0x13ff   :  { %v1816_v9 = vpop.eup %1815  ;;  %v1493_v14 = vmul.f32 %v1814_v8, %v1370_v28 }
0x1400   :  { %v1468_v37 = vmul.f32 %v1816_v9, %v1345_v12 }
0x145e   :  { %v1496_v6 = vpop.permute.xlu1 %1495 }
0x145f   :  { %v1498_v63 = vmul.f32 %v1814_v8, %v1496_v6 }
0x1460   :  { %v1471_v10 = vpop.permute.xlu0 %1470 }
0x1461   :  { %1500 = vrot.lane.b32.xlu1 %v1498_v63, %s1903_s0  ;;  %v1473_v21 = vmul.f32 %v1816_v9, %v1471_v10 }
0x1463   :  { %1475 = vrot.lane.b32.xlu0 %v1473_v21, %s1903_s0 }
0x14d3   :  { %v1501_v0 = vpop.permute.xlu1 %1500 }
0x14d4   :  { %v1503_v36 = vadd.f32 %v1501_v0, %v1493_v14 }
0x14d5   :  { %v1476_v38 = vpop.permute.xlu0 %1475 }
0x14d6   :  { %1817 = vtanh.f32 %v1503_v36  ;;  %v1478_v40 = vadd.f32 %v1476_v38, %v1468_v37 }
0x14d8   :  { %1819 = vtanh.f32 %v1478_v40 }
0x14e3   :  { %v1818_v41 = vpop.eup %1817 }
0x14e4   :  { %1506 = vrot.lane.b32.xlu1 %v1818_v41, %s1903_s0 }
0x14e5   :  { %v1820_v42 = vpop.eup %1819 }
0x14e6   :  { %1481 = vrot.lane.b32.xlu0 %v1820_v42, %s1903_s0 }
0x1556   :  { %v1507_v43 = vpop.permute.xlu1 %1506 }
0x1557   :  { %v1509_v44 = vmul.f32 %v1814_v8, %v1507_v43 }
0x1558   :  { %v1482_v45 = vpop.permute.xlu0 %1481 }
0x1559   :  { %1511 = vrot.lane.b32.xlu0 %v1509_v44, %s1897_s9  ;;  %v1484_v46 = vmul.f32 %v1816_v9, %v1482_v45 }
0x155b   :  { %1515 = vrot.lane.b32.xlu1 %v1484_v46, %s1904_s27 }
0x15cb   :  { %v1512_v47 = vpop.permute.xlu0 %1511 }
0x15cd   :  { %v1516_v48 = vpop.permute.xlu1 %1515 }
0x15ce   :  { %v1518_v49 = vsel %vm90_vm0, %v1512_v47, %v1516_v48 }
0x15cf   :  { %1688 = vmatmul.mubr.msk.f32.vlgmr.msra.gmra.mxu0 %vm581_vm1, %v1518_v49 }
0x168f   :  { %v1588_v50 = vpop.f32.mrf.mxu0 }
0x1691   :  { %v1589_v51 = vpop.f32.mrf.mxu0 }
0x1692   :  { %v1592_v22 = vadd.f32 %v1830_v33, %v1589_v51 }
0x1694   :  { %1821 = vtanh.f32 %v1592_v22  ;;  %v1689_v17 = vmul.f32 -1.442695, %v1592_v22 }
0x1696   :  { %1823 = vpow2.f32 %v1689_v17 }
0x16a1   :  { %v1822_v20 = vpop.eup %1821 }
0x16a2   :  { %1602 = vrot.lane.b32.xlu0 %v1822_v20, %s1903_s0 }
0x16a3   :  { %v1824_v25 = vpop.eup %1823 }
0x16a4   :  { %v1596_v16 = vadd.f32 1.0, %v1824_v25 }
0x16a6   :  { %1825 = vrcp.f32 %v1596_v16 }
0x16b3   :  { %v1826_v27 = vpop.eup %1825 }
0x16b4   :  { %v1600_v30 = vmul.f32 %v1826_v27, %v1478_v40 }
0x1714   :  { %v1603_v19 = vpop.permute.xlu0 %1602 }
0x1715   :  { %v1605_v28 = vmul.f32 %v1826_v27, %v1603_v19 }
0x1717   :  { %1607 = vrot.lane.b32.xlu1 %v1605_v28, %s1903_s0 }
0x171b   :  { %1617 = vrot.lane.b32.xlu1 %v2123_v18, %s1897_s9 }
0x171f   :  { %1620 = vrot.lane.b32.xlu1 %v2264_v23, %s1903_s0 }
0x1789   :  { %v1608_v31 = vpop.permute.xlu1 %1607 }
0x178a   :  { %v1610_v12 = vadd.f32 %v1608_v31, %v1600_v30 }
0x178c   :  { %1827 = vtanh.f32 %v1610_v12 }
0x178d   :  { %v1618_v52 = vpop.permute.xlu1 %1617 }
0x178e   :  { %v1630_v18 = vsel %vm90_vm0, %v1618_v52, %v2181_v29 }
0x178f   :  { %v1631_v60 = vsel %vm581_vm1, %v1630_v18, %v2222_v24 }
0x1791   :  { %v1621_v53 = vpop.permute.xlu1 %1620 }
0x1792   :  { %v1633_v55 = vsel %vm1632_vm2, %v1631_v60, %v1621_v53 }
0x1799   :  { %v1828_v56 = vpop.eup %1827 }
0x179a   :  { %1613 = vrot.lane.b32.xlu0 %v1828_v56, %s1903_s0 }
0x179e   :  { %1623 = vrot.lane.b32.xlu0 %v2305_v15, %s1897_s9 }
0x180c   :  { %v1614_v26 = vpop.permute.xlu0 %1613 }
0x180d   :  { %v1616_v39 = vmul.f32 %v1826_v27, %v1614_v26 }
0x180f   :  { %1627 = vrot.lane.b32.xlu0 %v1616_v39, %s1903_s0 }
0x1810   :  { %v1624_v13 = vpop.permute.xlu0 %1623 }
0x1811   :  { %v1634_v23 = vsel %vm90_vm0, %v1624_v13, %v2343_v35 }
0x1812   :  { %v1635_v54 = vsel %vm581_vm1, %v1634_v23, %v1484_v46 }
0x1881   :  { %v1628_v15 = vpop.permute.xlu0 %1627 }
0x1882   :  { %v1636_v57 = vsel %vm1632_vm2, %v1635_v54, %v1628_v15 }
0x1883   :  { %v1639_v58 = vcombine.low %v1633_v55, %v1636_v57 }
0x1885   :  { %1690 = vst.sshfl [vmem:[%s2392_s8] sm:$0x33 pattern:$0x76325410] %v1639_v58 }
0x1886   :  { %1657 = vsyncpa [#allocation3], 1 }
0x1887   :  { %1658 = vsyncpa [#allocation5], 1 }

</bundles_post_ra>
